<compile_context>
chip_gen: v7x
topology: tpu7x:2x2x1
jax: 0.10.0
libtpu: 0.0.40
codegen_flags: <defaults>
</compile_context>

<pallas_src>
from functools import partial

import jax
import jax.numpy as jnp
from jax.experimental import pallas as pl
from jax.experimental.pallas import tpu as pltpu


def _round_up(n, m):
    return (n + m - 1) // m * m


def _cdiv(a, b):
    return (a + b - 1) // b


def mlp_kernel(x_ref,
               w1_ref, b1_ref,
               w2_ref, b2_ref,
               w3_ref, b3_ref,
               w5_ref, b5_ref,
               o_ref):
    """Whole MLP hot path fused: 4 MXU matmuls + bias + ReLU per batch tile.

    Hidden layers: bf16 operands, f32 MXU accumulation, then a bf16 epilogue
    (bias-add + ReLU in bf16) which directly feeds the next matmul.
    Final layer: f32 bias-add, f32 store.  dropout(p=0) == identity.
    """
    def hidden(h_bf16, w_ref, b_ref):
        acc = jnp.dot(h_bf16, w_ref[...], preferred_element_type=jnp.float32)
        # bf16 epilogue: one cast + packed bias/ReLU (2 elems/lane on v6e/v7x).
        return jnp.maximum(acc.astype(jnp.bfloat16) + b_ref[...], 0)

    h = hidden(x_ref[...], w1_ref, b1_ref)
    h = hidden(h, w2_ref, b2_ref)
    h = hidden(h, w3_ref, b3_ref)
    out = jnp.dot(h, w5_ref[...], preferred_element_type=jnp.float32) + b5_ref[...]
    o_ref[...] = out.astype(o_ref.dtype)


def init_params(key, n_in, n_out):
    """Deterministic init mimicking torch.nn.Linear (uniform +/- 1/sqrt(fan_in)).

    Logical (unpadded) shapes, weights stored as (in, out), biases as (1, out).
    f4 (400->200) is never used in MyNet1.forward, so it is omitted.
    """
    dims = {"1": (n_in, 1000), "2": (1000, 500), "3": (500, 200), "5": (200, n_out)}
    params = {}
    for name, (fi, fo) in dims.items():
        key, kw, kb = jax.random.split(key, 3)
        bound = 1.0 / jnp.sqrt(fi)
        params[f"w{name}"] = jax.random.uniform(
            kw, (fi, fo), jnp.float32, minval=-bound, maxval=bound)
        params[f"b{name}"] = jax.random.uniform(
            kb, (1, fo), jnp.float32, minval=-bound, maxval=bound)
    return params


def prepare_params(params):
    """Zero-pad every feature dim to a multiple of 128; cast weights to bf16.

    Zero padding preserves exact semantics: padded hidden units compute
    relu(0 + 0) = 0 and padded weight rows/columns contribute nothing.
    Hidden-layer biases are bf16 (bf16 epilogue); the final bias stays f32.
    """
    prepared = {}
    for name in ("1", "2", "3", "5"):
        w = params[f"w{name}"]
        b = params[f"b{name}"]
        fi, fo = w.shape
        fi_p, fo_p = _round_up(fi, 128), _round_up(fo, 128)
        b_dtype = jnp.float32 if name == "5" else jnp.bfloat16
        wp = jnp.zeros((fi_p, fo_p), jnp.bfloat16).at[:fi, :fo].set(
            w.astype(jnp.bfloat16))
        bp = jnp.zeros((1, fo_p), b_dtype).at[:, :fo].set(b.astype(b_dtype))
        prepared[f"w{name}"] = wp
        prepared[f"b{name}"] = bp
    return prepared


def _choose_tiling(B):
    """Pick (steps, tile_b) from the static batch size.

    Tiny batches (B <= 128): single grid step, tile rounded to 16 (bf16
    sublane packing) -- weight-DMA/latency-bound, keep on one TensorCore.
    Otherwise: at least 2 steps (so dimension_semantics=("parallel",) shards
    the batch across both v7x TCs), ~512 rows/step, tiles rounded to 128.
    """
    if B <= 128:
        return 1, max(16, _round_up(B, 16))
    steps = max(2, _cdiv(B, 512))
    tile_b = _round_up(_cdiv(B, steps), 128)   # <= 512 by construction
    return steps, tile_b


@partial(jax.jit, static_argnames=("n_out",))
def mynet1_forward(x, prepared, n_out):
    """x: (B, n_in) float32.  prepared: padded params from prepare_params.

    Pad, pallas_call and de-pad slice all live inside this jit so the host
    pays one dispatch and the pad/slice fuse into the surrounding graph.
    """
    B, n_in = x.shape
    n_in_p = prepared["w1"].shape[0]
    n_out_p = prepared["w5"].shape[1]

    steps, tile_b = _choose_tiling(B)
    Bp = steps * tile_b
    grid = (steps,)

    # Zero-pad batch/features and cast the matmul operand to bf16.
    xp = jnp.pad(x.astype(jnp.bfloat16), ((0, Bp - B), (0, n_in_p - n_in)))

    # Cost estimate (padded dims): documents the roofline for XLA's scheduler.
    w_names = ("w1", "w2", "w3", "w5")
    flops = 2 * Bp * sum(
        prepared[w].shape[0] * prepared[w].shape[1] for w in w_names)
    bytes_accessed = (
        int(xp.size) * 2
        + sum(int(v.size) * v.dtype.itemsize for v in prepared.values())
        + Bp * n_out_p * 4)
    cost = pl.CostEstimate(flops=int(flops), transcendentals=0,
                           bytes_accessed=int(bytes_accessed))

    # Weights/biases are grid-invariant: constant block index, fetched once.
    resident = lambda shape: pl.BlockSpec(shape, lambda i: (0, 0))

    out_p = pl.pallas_call(
        mlp_kernel,
        out_shape=jax.ShapeDtypeStruct((Bp, n_out_p), jnp.float32),
        grid_spec=pltpu.PrefetchScalarGridSpec(
            num_scalar_prefetch=0,
            grid=grid,
            in_specs=[
                pl.BlockSpec((tile_b, n_in_p), lambda i: (i, 0)),  # x batch tile
                resident(prepared["w1"].shape), resident(prepared["b1"].shape),
                resident(prepared["w2"].shape), resident(prepared["b2"].shape),
                resident(prepared["w3"].shape), resident(prepared["b3"].shape),
                resident(prepared["w5"].shape), resident(prepared["b5"].shape),
            ],
            # Lane-dense output: last dim is the 128-padded n_out.
            out_specs=pl.BlockSpec((tile_b, n_out_p), lambda i: (i, 0)),
        ),
        compiler_params=pltpu.CompilerParams(
            dimension_semantics=("parallel",),
            vmem_limit_bytes=32 * 1024 * 1024,
        ),
        cost_estimate=cost,
    )(xp,
      prepared["w1"], prepared["b1"],
      prepared["w2"], prepared["b2"],
      prepared["w3"], prepared["b3"],
      prepared["w5"], prepared["b5"])

    # Slice the zero-padded batch rows / output columns back off (fused by jit).
    return out_p[:B, :n_out]


def reference_forward(x, params, dot_dtype=jnp.float32):
    """Pure-JAX reference on the logical (unpadded) params.

    dot_dtype=jnp.bfloat16 mirrors the kernel's matmul numerics (bf16
    operands, f32 accumulation); dot_dtype=f32 is the PyTorch-exact path.
    """
    def dense(h, w, b):
        return jnp.dot(h.astype(dot_dtype), w.astype(dot_dtype),
                       preferred_element_type=jnp.float32) + b

    h = jnp.maximum(dense(x, params["w1"], params["b1"]), 0.0)
    h = jnp.maximum(dense(h, params["w2"], params["b2"]), 0.0)
    h = jnp.maximum(dense(h, params["w3"], params["b3"]), 0.0)
    return dense(h, params["w5"], params["b5"])


if __name__ == "__main__":
    n_in, n_out = 32, 10
    key = jax.random.PRNGKey(0)
    kx, kp, kx2 = jax.random.split(key, 3)

    params = init_params(kp, n_in, n_out)
    prepared = prepare_params(params)

    # Check 1: tiny batch (B=8) -> single grid step, weight-DMA-bound regime.
    B = 8
    x = jax.random.normal(kx, (B, n_in), jnp.float32)
    out = jax.block_until_ready(mynet1_forward(x, prepared, n_out))
    assert out.shape == (B, n_out)

    ref_bf16 = reference_forward(x, params, dot_dtype=jnp.bfloat16)  # kernel numerics
    ref_f32 = reference_forward(x, params, dot_dtype=jnp.float32)
    assert jnp.allclose(out, ref_bf16, atol=5e-3, rtol=5e-3)
    assert jnp.allclose(out, ref_f32, atol=5e-2, rtol=5e-2)

    # Check 2: batch > 128 and not a tile multiple -> 2 "parallel" grid steps
    # (the path that shards across v7x's two TensorCores) + batch padding.
    B2 = 136
    x2 = jax.random.normal(kx2, (B2, n_in), jnp.float32)
    out2 = jax.block_until_ready(mynet1_forward(x2, prepared, n_out))
    assert out2.shape == (B2, n_out)
    ref2 = reference_forward(x2, params, dot_dtype=jnp.bfloat16)
    assert jnp.allclose(out2, ref2, atol=5e-3, rtol=5e-3)

    print("KERNEL_OK")
</pallas_src>

<mosaic_0001>
module attributes {stable_mosaic.version = 11 : i64} {
  func.func @mlp_kernel(%arg0: i32, %arg1: memref<16x128xbf16, #tpu.memory_space<vmem>>, %arg2: memref<128x1024xbf16, #tpu.memory_space<vmem>>, %arg3: memref<1x1024xbf16, #tpu.memory_space<vmem>>, %arg4: memref<1024x512xbf16, #tpu.memory_space<vmem>>, %arg5: memref<1x512xbf16, #tpu.memory_space<vmem>>, %arg6: memref<512x256xbf16, #tpu.memory_space<vmem>>, %arg7: memref<1x256xbf16, #tpu.memory_space<vmem>>, %arg8: memref<256x128xbf16, #tpu.memory_space<vmem>>, %arg9: memref<1x128xf32, #tpu.memory_space<vmem>>, %arg10: memref<16x128xf32, #tpu.memory_space<vmem>>) attributes {dimension_semantics = [#tpu.dimension_semantics<parallel>], iteration_bounds = array<i64: 1>, scalar_prefetch = 0 : i64, scratch_operands = 0 : i64, tpu.core_type = #tpu.core_type<tc>, window_params = [{transform_indices = @transform_0, window_bounds = array<i64: 16, 128>}, {pipeline_mode = #tpu.pipeline_mode<synchronous>, transform_indices = @transform_1, window_bounds = array<i64: 128, 1024>}, {pipeline_mode = #tpu.pipeline_mode<synchronous>, transform_indices = @transform_2, window_bounds = array<i64: 1, 1024>}, {pipeline_mode = #tpu.pipeline_mode<synchronous>, transform_indices = @transform_3, window_bounds = array<i64: 1024, 512>}, {pipeline_mode = #tpu.pipeline_mode<synchronous>, transform_indices = @transform_4, window_bounds = array<i64: 1, 512>}, {pipeline_mode = #tpu.pipeline_mode<synchronous>, transform_indices = @transform_5, window_bounds = array<i64: 512, 256>}, {pipeline_mode = #tpu.pipeline_mode<synchronous>, transform_indices = @transform_6, window_bounds = array<i64: 1, 256>}, {pipeline_mode = #tpu.pipeline_mode<synchronous>, transform_indices = @transform_7, window_bounds = array<i64: 256, 128>}, {pipeline_mode = #tpu.pipeline_mode<synchronous>, transform_indices = @transform_8, window_bounds = array<i64: 1, 128>}, {transform_indices = @transform_9, window_bounds = array<i64: 16, 128>}]} {
    %c0 = arith.constant 0 : index
    %c0_0 = arith.constant 0 : index
    %0 = vector.load %arg1[%c0, %c0_0] : memref<16x128xbf16, #tpu.memory_space<vmem>>, vector<16x128xbf16>
    %c0_1 = arith.constant 0 : index
    %c0_2 = arith.constant 0 : index
    %1 = vector.load %arg2[%c0_1, %c0_2] : memref<128x1024xbf16, #tpu.memory_space<vmem>>, vector<128x1024xbf16>
    %cst = arith.constant dense<0.000000e+00> : vector<16x1024xf32>
    %2 = tpu.matmul %0, %1, %cst {dimension_numbers = #tpu.dot_dimension_numbers<[1], [0], [0], [1], [0, 0, 1, 1], [], []>} : vector<16x128xbf16>, vector<128x1024xbf16>, vector<16x1024xf32> -> vector<16x1024xf32>
    %3 = arith.truncf %2 : vector<16x1024xf32> to vector<16x1024xbf16>
    %c0_3 = arith.constant 0 : index
    %c0_4 = arith.constant 0 : index
    %4 = vector.load %arg3[%c0_3, %c0_4] : memref<1x1024xbf16, #tpu.memory_space<vmem>>, vector<1x1024xbf16>
    %5 = vector.broadcast %4 : vector<1x1024xbf16> to vector<16x1024xbf16>
    %6 = arith.addf %3, %5 : vector<16x1024xbf16>
    %cst_5 = arith.constant 0.000000e+00 : bf16
    %7 = vector.broadcast %cst_5 : bf16 to vector<16x1024xbf16>
    %8 = arith.maximumf %6, %7 : vector<16x1024xbf16>
    %c0_6 = arith.constant 0 : index
    %c0_7 = arith.constant 0 : index
    %9 = vector.load %arg4[%c0_6, %c0_7] : memref<1024x512xbf16, #tpu.memory_space<vmem>>, vector<1024x512xbf16>
    %cst_8 = arith.constant dense<0.000000e+00> : vector<16x512xf32>
    %10 = tpu.matmul %8, %9, %cst_8 {dimension_numbers = #tpu.dot_dimension_numbers<[1], [0], [0], [1], [0, 0, 1, 1], [], []>} : vector<16x1024xbf16>, vector<1024x512xbf16>, vector<16x512xf32> -> vector<16x512xf32>
    %11 = arith.truncf %10 : vector<16x512xf32> to vector<16x512xbf16>
    %c0_9 = arith.constant 0 : index
    %c0_10 = arith.constant 0 : index
    %12 = vector.load %arg5[%c0_9, %c0_10] : memref<1x512xbf16, #tpu.memory_space<vmem>>, vector<1x512xbf16>
    %13 = vector.broadcast %12 : vector<1x512xbf16> to vector<16x512xbf16>
    %14 = arith.addf %11, %13 : vector<16x512xbf16>
    %cst_11 = arith.constant 0.000000e+00 : bf16
    %15 = vector.broadcast %cst_11 : bf16 to vector<16x512xbf16>
    %16 = arith.maximumf %14, %15 : vector<16x512xbf16>
    %c0_12 = arith.constant 0 : index
    %c0_13 = arith.constant 0 : index
    %17 = vector.load %arg6[%c0_12, %c0_13] : memref<512x256xbf16, #tpu.memory_space<vmem>>, vector<512x256xbf16>
    %cst_14 = arith.constant dense<0.000000e+00> : vector<16x256xf32>
    %18 = tpu.matmul %16, %17, %cst_14 {dimension_numbers = #tpu.dot_dimension_numbers<[1], [0], [0], [1], [0, 0, 1, 1], [], []>} : vector<16x512xbf16>, vector<512x256xbf16>, vector<16x256xf32> -> vector<16x256xf32>
    %19 = arith.truncf %18 : vector<16x256xf32> to vector<16x256xbf16>
    %c0_15 = arith.constant 0 : index
    %c0_16 = arith.constant 0 : index
    %20 = vector.load %arg7[%c0_15, %c0_16] : memref<1x256xbf16, #tpu.memory_space<vmem>>, vector<1x256xbf16>
    %21 = vector.broadcast %20 : vector<1x256xbf16> to vector<16x256xbf16>
    %22 = arith.addf %19, %21 : vector<16x256xbf16>
    %cst_17 = arith.constant 0.000000e+00 : bf16
    %23 = vector.broadcast %cst_17 : bf16 to vector<16x256xbf16>
    %24 = arith.maximumf %22, %23 : vector<16x256xbf16>
    %c0_18 = arith.constant 0 : index
    %c0_19 = arith.constant 0 : index
    %25 = vector.load %arg8[%c0_18, %c0_19] : memref<256x128xbf16, #tpu.memory_space<vmem>>, vector<256x128xbf16>
    %cst_20 = arith.constant dense<0.000000e+00> : vector<16x128xf32>
    %26 = tpu.matmul %24, %25, %cst_20 {dimension_numbers = #tpu.dot_dimension_numbers<[1], [0], [0], [1], [0, 0, 1, 1], [], []>} : vector<16x256xbf16>, vector<256x128xbf16>, vector<16x128xf32> -> vector<16x128xf32>
    %c0_21 = arith.constant 0 : index
    %c0_22 = arith.constant 0 : index
    %27 = vector.load %arg9[%c0_21, %c0_22] : memref<1x128xf32, #tpu.memory_space<vmem>>, vector<1x128xf32>
    %28 = vector.broadcast %27 : vector<1x128xf32> to vector<16x128xf32>
    %29 = arith.addf %26, %28 : vector<16x128xf32>
    %c0_23 = arith.constant 0 : index
    %c0_24 = arith.constant 0 : index
    %30 = vector.load %arg10[%c0_23, %c0_24] : memref<16x128xf32, #tpu.memory_space<vmem>>, vector<16x128xf32>
    tpu.vector_store %arg10[%c0_23, %c0_24], %29 {strides = array<i32>} : memref<16x128xf32, #tpu.memory_space<vmem>>, vector<16x128xf32>,
    return
  }
  func.func @transform_0(%arg0: i32) -> (i32, i32) {
    %c0_i32 = arith.constant 0 : i32
    %c0_i32_0 = arith.constant 0 : i32
    return %arg0, %c0_i32 : i32, i32
  }
  func.func @transform_1(%arg0: i32) -> (i32, i32) {
    %c0_i32 = arith.constant 0 : i32
    %c0_i32_0 = arith.constant 0 : i32
    %c0_i32_1 = arith.constant 0 : i32
    return %c0_i32, %c0_i32_0 : i32, i32
  }
  func.func @transform_2(%arg0: i32) -> (i32, i32) {
    %c0_i32 = arith.constant 0 : i32
    %c0_i32_0 = arith.constant 0 : i32
    %c0_i32_1 = arith.constant 0 : i32
    return %c0_i32, %c0_i32_0 : i32, i32
  }
  func.func @transform_3(%arg0: i32) -> (i32, i32) {
    %c0_i32 = arith.constant 0 : i32
    %c0_i32_0 = arith.constant 0 : i32
    %c0_i32_1 = arith.constant 0 : i32
    return %c0_i32, %c0_i32_0 : i32, i32
  }
  func.func @transform_4(%arg0: i32) -> (i32, i32) {
    %c0_i32 = arith.constant 0 : i32
    %c0_i32_0 = arith.constant 0 : i32
    %c0_i32_1 = arith.constant 0 : i32
    return %c0_i32, %c0_i32_0 : i32, i32
  }
  func.func @transform_5(%arg0: i32) -> (i32, i32) {
    %c0_i32 = arith.constant 0 : i32
    %c0_i32_0 = arith.constant 0 : i32
    %c0_i32_1 = arith.constant 0 : i32
    return %c0_i32, %c0_i32_0 : i32, i32
  }
  func.func @transform_6(%arg0: i32) -> (i32, i32) {
    %c0_i32 = arith.constant 0 : i32
    %c0_i32_0 = arith.constant 0 : i32
    %c0_i32_1 = arith.constant 0 : i32
    return %c0_i32, %c0_i32_0 : i32, i32
  }
  func.func @transform_7(%arg0: i32) -> (i32, i32) {
    %c0_i32 = arith.constant 0 : i32
    %c0_i32_0 = arith.constant 0 : i32
    %c0_i32_1 = arith.constant 0 : i32
    return %c0_i32, %c0_i32_0 : i32, i32
  }
  func.func @transform_8(%arg0: i32) -> (i32, i32) {
    %c0_i32 = arith.constant 0 : i32
    %c0_i32_0 = arith.constant 0 : i32
    %c0_i32_1 = arith.constant 0 : i32
    return %c0_i32, %c0_i32_0 : i32, i32
  }
  func.func @transform_9(%arg0: i32) -> (i32, i32) {
    %c0_i32 = arith.constant 0 : i32
    %c0_i32_0 = arith.constant 0 : i32
    return %arg0, %c0_i32 : i32, i32
  }
}

</mosaic_0001>

<bundles_post_ra>
// kernel: mynet1_forward.1
= control target key start
LH: loop header
LB: loop body
LE: loop exit
PB: predicated region body
PF: predicated region fallthrough
CT: control target
= control target key end

     0   :  { %14 = vsyncpa [#allocation3], 0  ;;  %s4750_s0 = inlined_call_operand.vmem [shape: bf16[16,128], index: 0, kind: input, shape index: {}]   ;;  %s4751_s1 = inlined_call_operand.hbm [shape: bf16[128,1024], index: 1, kind: input, shape index: {}]   ;;  %s4752_s2 = inlined_call_operand.vmem [shape: bf16[1,1024], index: 2, kind: input, shape index: {}]   ;;  %s4753_s3 = inlined_call_operand.hbm [shape: bf16[1024,512], index: 3, kind: input, shape index: {}]   ;;  %s4754_s4 = inlined_call_operand.vmem [shape: bf16[1,512], index: 4, kind: input, shape index: {}]   ;;  %s4755_s5 = inlined_call_operand.hbm [shape: bf16[512,256], index: 5, kind: input, shape index: {}]   ;;  %s4756_s6 = inlined_call_operand.vmem [shape: bf16[1,256], index: 6, kind: input, shape index: {}]   ;;  %s4757_s7 = inlined_call_operand.hbm [shape: bf16[256,128], index: 7, kind: input, shape index: {}]   ;;  %s4758_s8 = inlined_call_operand.vmem [shape: f32[1,128], index: 8, kind: input, shape index: {}]   ;;  %s4759_s9 = inlined_call_operand.vmem [shape: f32[16,128], index: 9, kind: output, shape index: {}]  }
   0x1   :  { %15 = vsyncpa [#allocation5], 0 }
   0x2   :  { %16 = vsyncpa [#allocation8], 0  ;;  %s4488_s30 = smov [#allocation4]   ;;  %s4394_s13 = scalar_lea.hbm %s4753_s3, 32768 }
   0x3   :  { %s38_s10 = sshll.u32 %s4488_s30, 4  ;;  %p4395_p0 = scmp.ne.s32.totalorder %s4753_s3, %s4394_s13  ;;  %s39_s10 = int_to_ptr.vmem [resolvable:$true] %s38_s10 }
   0x4   :  { %p4398_p1 = scmp.lt.u32.totalorder %s4394_s13, %s4753_s3 }
   0x6   :  { %p4400_p2 = pnand %p4398_p1, %p4395_p0 }
   0x8   :  { %4403 = shalt.err (!%p4400_p2)
}
   0x9   :  { %s4404_s18 = scalar_lea.vmem %s39_s10, 32768  ;;  %p4409_p4 = scmp.lt.s32.totalorder %s39_s10, %s39_s10 }
   0xa   :  { %p4405_p3 = scmp.ne.s32.totalorder %s39_s10, %s4404_s18  ;;  %p4410_p5 = scmp.lt.s32.totalorder %s4404_s18, %s4404_s18 }
   0xc   :  { %p4411_p6 = por %p4410_p5, %p4409_p4 }
   0xe   :  { %p4412_p7 = pnand %p4411_p6, %p4405_p3 }
  0x10   :  { %4415 = shalt.err (!%p4412_p7)
}
  0x11   :  { %s4489_s19 = smov 256   ;;  %s4490_s20 = smov 16  }
  0x12   :  { %44 = dma.hbm_to_vmem [thread:$0]  %s4753_s3, 32768, %s39_s10, [#allocation5], %s4489_s19, %s4489_s19, %s4490_s20  }
  0x13   :  { %s4491_s23 = smov [#allocation2]   ;;  %s4416_s27 = scalar_lea.hbm %s4751_s1, 8192 }
  0x14   :  { %s24_s24 = sshll.u32 %s4491_s23, 4  ;;  %p4417_p8 = scmp.ne.s32.totalorder %s4751_s1, %s4416_s27  ;;  %s25_s24 = int_to_ptr.vmem [resolvable:$true] %s24_s24 }
  0x15   :  { %p4420_p9 = scmp.lt.u32.totalorder %s4416_s27, %s4751_s1 }
  0x17   :  { %p4422_p10 = pnand %p4420_p9, %p4417_p8 }
  0x19   :  { %4425 = shalt.err (!%p4422_p10)
}
  0x1a   :  { %s4426_s12 = scalar_lea.vmem %s25_s24, 8192  ;;  %p4431_p12 = scmp.lt.s32.totalorder %s25_s24, %s25_s24 }
  0x1b   :  { %p4427_p11 = scmp.ne.s32.totalorder %s25_s24, %s4426_s12  ;;  %p4432_p13 = scmp.lt.s32.totalorder %s4426_s12, %s4426_s12 }
  0x1d   :  { %p4433_p0 = por %p4432_p13, %p4431_p12 }
  0x1f   :  { %p4434_p1 = pnand %p4433_p0, %p4427_p11 }
  0x21   :  { %4437 = shalt.err (!%p4434_p1)
}
  0x22   :  { %s4492_s3 = smov 512   ;;  %s4493_s10 = smov 32  }
  0x23   :  { %30 = dma.hbm_to_vmem [thread:$0]  %s4751_s1, 8192, %s25_s24, [#allocation3], %s4492_s3, %s4492_s3, %s4493_s10  }
  0x24   :  { %s4494_s15 = smov [#allocation6]   ;;  %s4438_s19 = scalar_lea.hbm %s4755_s5, 8192 }
  0x25   :  { %s52_s16 = sshll.u32 %s4494_s15, 4  ;;  %p4439_p2 = scmp.ne.s32.totalorder %s4755_s5, %s4438_s19  ;;  %s53_s16 = int_to_ptr.vmem [resolvable:$true] %s52_s16 }
  0x26   :  { %p4442_p3 = scmp.lt.u32.totalorder %s4438_s19, %s4755_s5 }
  0x28   :  { %p4444_p4 = pnand %p4442_p3, %p4439_p2 }
  0x2a   :  { %4447 = shalt.err (!%p4444_p4)
}
  0x2b   :  { %s4448_s25 = scalar_lea.vmem %s53_s16, 8192  ;;  %p4453_p6 = scmp.lt.s32.totalorder %s53_s16, %s53_s16 }
  0x2c   :  { %p4449_p5 = scmp.ne.s32.totalorder %s53_s16, %s4448_s25  ;;  %p4454_p7 = scmp.lt.s32.totalorder %s4448_s25, %s4448_s25 }
  0x2e   :  { %p4455_p8 = por %p4454_p7, %p4453_p6 }
  0x30   :  { %p4456_p9 = pnand %p4455_p8, %p4449_p5 }
  0x32   :  { %4459 = shalt.err (!%p4456_p9)
}
  0x33   :  { %s4495_s1 = smov 128   ;;  %s4496_s24 = smov 8  }
  0x34   :  { %58 = dma.hbm_to_vmem [thread:$0]  %s4755_s5, 8192, %s53_s16, [#allocation5], %s4495_s1, %s4495_s1, %s4496_s24  }
  0x35   :  { %s4497_s28 = smov [#allocation7]   ;;  %s4460_s12 = scalar_lea.hbm %s4757_s7, 2048 }
  0x36   :  { %s66_s29 = sshll.u32 %s4497_s28, 4  ;;  %p4461_p10 = scmp.ne.s32.totalorder %s4757_s7, %s4460_s12  ;;  %s67_s29 = int_to_ptr.vmem [resolvable:$true] %s66_s29 }
  0x37   :  { %p4464_p11 = scmp.lt.u32.totalorder %s4460_s12, %s4757_s7 }
  0x39   :  { %p4466_p12 = pnand %p4464_p11, %p4461_p10 }
  0x3b   :  { %4469 = shalt.err (!%p4466_p12)
}
  0x3c   :  { %s4470_s15 = scalar_lea.vmem %s67_s29, 2048  ;;  %p4475_p0 = scmp.lt.s32.totalorder %s67_s29, %s67_s29 }
  0x3d   :  { %p4471_p13 = scmp.ne.s32.totalorder %s67_s29, %s4470_s15  ;;  %p4476_p1 = scmp.lt.s32.totalorder %s4470_s15, %s4470_s15 }
  0x3f   :  { %p4477_p2 = por %p4476_p1, %p4475_p0 }
  0x41   :  { %p4478_p3 = pnand %p4477_p2, %p4471_p13 }
  0x43   :  { %4481 = shalt.err (!%p4478_p3)
}
  0x44   :  { %s4498_s5 = smov 64   ;;  %s4499_s16 = smov 4  }
  0x45   :  { %72 = dma.hbm_to_vmem [thread:$0]  %s4757_s7, 2048, %s67_s29, [#allocation8], %s4498_s5, %s4498_s5, %s4499_s16  }
  0x46   :  { %4482 = dma.done.wait [#allocation3], 8192  }
  0x47   :  { %4483 = vsyncadd [#allocation3], 4294959104 }
  0x48   :  { %4484 = dma.done.wait [#allocation5], 40960  }
  0x49   :  { %4485 = vsyncadd [#allocation5], 4294926336 }
  0x4a   :  { %4486 = dma.done.wait [#allocation8], 2048  }
  0x4b   :  { %4487 = vsyncadd [#allocation8], 4294965248  ;;  %v4500_v0 = vmov 0   ;;  %v90_v1 = vld [vmem:[#allocation2] sm:$0xff]  ;;  %v92_v18 = vld [vmem:[#allocation2 + $0x10] sm:$0xff] }
  0x4c   :  { %512 = vmatprep.mubr.bf16.mxu1 %v4500_v0  ;;  %598 = vmatprep.mubr.bf16.mxu0 %v4500_v0  ;;  %v94_v2 = vld [vmem:[#allocation2 + $0x20] sm:$0xff]  ;;  %v96_v20 = vld [vmem:[#allocation2 + $0x30] sm:$0xff]  ;;  %v91_v48 = vld [vmem:[#allocation2 + $0x8] sm:$0xff] }
  0x4d   :  { %v98_v3 = vld [vmem:[#allocation2 + $0x40] sm:$0xff]  ;;  %v3430_v4 = vcombine.high %v90_v1, %v94_v2  ;;  %v3429_v5 = vcombine.low %v90_v1, %v94_v2  ;;  %v100_v21 = vld [vmem:[#allocation2 + $0x50] sm:$0xff]  ;;  %v3434_v25 = vcombine.high %v92_v18, %v96_v20  ;;  %v3433_v26 = vcombine.low %v92_v18, %v96_v20  ;;  %v95_v49 = vld [vmem:[#allocation2 + $0x28] sm:$0xff] }
  0x4e   :  { %v102_v6 = vld [vmem:[#allocation2 + $0x60] sm:$0xff]  ;;  %v104_v22 = vld [vmem:[#allocation2 + $0x70] sm:$0xff]  ;;  %v3432_v58 = vcombine.high %v91_v48, %v95_v49  ;;  %v99_v59 = vld [vmem:[#allocation2 + $0x48] sm:$0xff]  ;;  %v3431_v1 = vcombine.low %v91_v48, %v95_v49 }
  0x4f   :  { %v3438_v7 = vcombine.high %v98_v3, %v102_v6  ;;  %v106_v8 = vld [vmem:[#allocation2 + $0x80] sm:$0xff]  ;;  %480 = vmatprep.subr.bf16.mxu1 %v3430_v4  ;;  %v3437_v10 = vcombine.low %v98_v3, %v102_v6  ;;  %v3442_v27 = vcombine.high %v100_v21, %v104_v22  ;;  %v108_v29 = vld [vmem:[#allocation2 + $0x90] sm:$0xff]  ;;  %566 = vmatprep.subr.bf16.mxu0 %v3434_v25  ;;  %v103_v61 = vld [vmem:[#allocation2 + $0x68] sm:$0xff] }
  0x50   :  { %v110_v9 = vld [vmem:[#allocation2 + $0xa0] sm:$0xff]  ;;  %481 = vmatpush1.bf16.msra.mxu1 %v3429_v5  ;;  %v112_v30 = vld [vmem:[#allocation2 + $0xb0] sm:$0xff]  ;;  %567 = vmatpush1.bf16.msra.mxu0 %v3433_v26  ;;  %v3441_v32 = vcombine.low %v100_v21, %v104_v22  ;;  %v3440_v2 = vcombine.high %v99_v59, %v103_v61  ;;  %v107_v3 = vld [vmem:[#allocation2 + $0x88] sm:$0xff] }
  0x51   :  { %482 = vmatprep.subr.bf16.mxu1 %v3438_v7  ;;  %v3446_v11 = vcombine.high %v106_v8, %v110_v9  ;;  %v114_v12 = vld [vmem:[#allocation2 + $0xc0] sm:$0xff]  ;;  %v3445_v14 = vcombine.low %v106_v8, %v110_v9  ;;  %568 = vmatprep.subr.bf16.mxu0 %v3442_v27  ;;  %v3450_v35 = vcombine.high %v108_v29, %v112_v30  ;;  %v116_v37 = vld [vmem:[#allocation2 + $0xd0] sm:$0xff]  ;;  %v111_v5 = vld [vmem:[#allocation2 + $0xa8] sm:$0xff] }
  0x52   :  { %v118_v13 = vld [vmem:[#allocation2 + $0xe0] sm:$0xff]  ;;  %v120_v38 = vld [vmem:[#allocation2 + $0xf0] sm:$0xff]  ;;  %v3449_v40 = vcombine.low %v108_v29, %v112_v30  ;;  %v3439_v9 = vcombine.low %v99_v59, %v103_v61  ;;  %v127_v18 = vld [vmem:[#allocation2 + $0x128] sm:$0xff] }
  0x53   :  { %v3454_v15 = vcombine.high %v114_v12, %v118_v13  ;;  %v122_v16 = vld [vmem:[#allocation2 + $0x100] sm:$0xff]  ;;  %v3453_v19 = vcombine.low %v114_v12, %v118_v13  ;;  %v3458_v44 = vcombine.high %v116_v37, %v120_v38  ;;  %v124_v45 = vld [vmem:[#allocation2 + $0x110] sm:$0xff]  ;;  %v3457_v50 = vcombine.low %v116_v37, %v120_v38  ;;  %v119_v13 = vld [vmem:[#allocation2 + $0xe8] sm:$0xff] }
  0x54   :  { %483 = vmatpush1.bf16.msra.mxu1 %v3437_v10  ;;  %v126_v17 = vld [vmem:[#allocation2 + $0x120] sm:$0xff]  ;;  %569 = vmatpush1.bf16.msra.mxu0 %v3441_v32  ;;  %v128_v46 = vld [vmem:[#allocation2 + $0x130] sm:$0xff]  ;;  %v3448_v10 = vcombine.high %v107_v3, %v111_v5  ;;  %v131_v22 = vld [vmem:[#allocation2 + $0x148] sm:$0xff] }
  0x55   :  { %484 = vmatprep.subr.bf16.mxu1 %v3446_v11  ;;  %v3462_v23 = vcombine.high %v122_v16, %v126_v17  ;;  %v130_v24 = vld [vmem:[#allocation2 + $0x140] sm:$0xff]  ;;  %v3461_v31 = vcombine.low %v122_v16, %v126_v17  ;;  %570 = vmatprep.subr.bf16.mxu0 %v3450_v35  ;;  %v3466_v52 = vcombine.high %v124_v45, %v128_v46  ;;  %v132_v53 = vld [vmem:[#allocation2 + $0x150] sm:$0xff]  ;;  %v115_v11 = vld [vmem:[#allocation2 + $0xc8] sm:$0xff] }
  0x56   :  { %v134_v28 = vld [vmem:[#allocation2 + $0x160] sm:$0xff]  ;;  %v136_v54 = vld [vmem:[#allocation2 + $0x170] sm:$0xff]  ;;  %v3465_v56 = vcombine.low %v124_v45, %v128_v46  ;;  %v123_v16 = vld [vmem:[#allocation2 + $0x108] sm:$0xff]  ;;  %v3456_v17 = vcombine.high %v115_v11, %v119_v13  ;;  %v3455_v21 = vcombine.low %v115_v11, %v119_v13 }
  0x57   :  { %v3470_v33 = vcombine.high %v130_v24, %v134_v28  ;;  %v138_v34 = vld [vmem:[#allocation2 + $0x180] sm:$0xff]  ;;  %v3469_v39 = vcombine.low %v130_v24, %v134_v28  ;;  %v3474_v60 = vcombine.high %v132_v53, %v136_v54  ;;  %v140_v62 = vld [vmem:[#allocation2 + $0x190] sm:$0xff]  ;;  %v3473_v4 = vcombine.low %v132_v53, %v136_v54  ;;  %v139_v28 = vld [vmem:[#allocation2 + $0x188] sm:$0xff] }
  0x58   :  { %485 = vmatpush1.bf16.msra.mxu1 %v3445_v14  ;;  %v142_v36 = vld [vmem:[#allocation2 + $0x1a0] sm:$0xff]  ;;  %571 = vmatpush1.bf16.msra.mxu0 %v3449_v40  ;;  %v144_v63 = vld [vmem:[#allocation2 + $0x1b0] sm:$0xff]  ;;  %v3464_v24 = vcombine.high %v123_v16, %v127_v18  ;;  %v3463_v27 = vcombine.low %v123_v16, %v127_v18  ;;  %v143_v29 = vld [vmem:[#allocation2 + $0x1a8] sm:$0xff] }
  0x59   :  { %486 = vmatprep.subr.bf16.mxu1 %v3454_v15  ;;  %v3478_v41 = vcombine.high %v138_v34, %v142_v36  ;;  %v146_v42 = vld [vmem:[#allocation2 + $0x1c0] sm:$0xff]  ;;  %v3477_v47 = vcombine.low %v138_v34, %v142_v36  ;;  %572 = vmatprep.subr.bf16.mxu0 %v3458_v44  ;;  %v3482_v6 = vcombine.high %v140_v62, %v144_v63  ;;  %v148_v7 = vld [vmem:[#allocation2 + $0x1d0] sm:$0xff]  ;;  %v147_v34 = vld [vmem:[#allocation2 + $0x1c8] sm:$0xff] }
  0x5a   :  { %v150_v43 = vld [vmem:[#allocation2 + $0x1e0] sm:$0xff]  ;;  %v152_v8 = vld [vmem:[#allocation2 + $0x1f0] sm:$0xff]  ;;  %v3481_v12 = vcombine.low %v140_v62, %v144_v63  ;;  %v3447_v15 = vcombine.low %v107_v3, %v111_v5  ;;  %v151_v35 = vld [vmem:[#allocation2 + $0x1e8] sm:$0xff]  ;;  %v3480_v36 = vcombine.high %v139_v28, %v143_v29 }
  0x5b   :  { %v3486_v51 = vcombine.high %v146_v42, %v150_v43  ;;  %v3485_v55 = vcombine.low %v146_v42, %v150_v43  ;;  %v4605_v57 = vld [vmem:[%s4750_s0] sm:$0xff]   ;;  %v3490_v14 = vcombine.high %v148_v7, %v152_v8  ;;  %v93_v40 = vld [vmem:[#allocation2 + $0x18] sm:$0xff]  ;;  %v3488_v42 = vcombine.high %v147_v34, %v151_v35 }
  0x5c   :  { %487 = vmatpush1.bf16.msra.mxu1 %v3453_v19  ;;  %573 = vmatpush1.bf16.msra.mxu0 %v3457_v50  ;;  %v3489_v19 = vcombine.low %v148_v7, %v152_v8  ;;  %v3899_v20 = vld [vmem:[#allocation4 + $0x4] ss:$16 sps:$4 sm:$0xff]   ;;  %v3897_v25 = vld [vmem:[#allocation4] ss:$16 sps:$4 sm:$0xff]   ;;  %v3487_v46 = vcombine.low %v147_v34, %v151_v35  ;;  %v105_v48 = vld [vmem:[#allocation2 + $0x78] sm:$0xff] }
  0x5d   :  { %488 = vmatprep.subr.bf16.mxu1 %v3462_v23  ;;  %574 = vmatprep.subr.bf16.mxu0 %v3466_v52  ;;  %v135_v23 = vld [vmem:[#allocation2 + $0x168] sm:$0xff]  ;;  %v3905_v26 = vld [vmem:[#allocation4 + $0x24] ss:$16 sps:$4 sm:$0xff]   ;;  %v3909_v37 = vld [vmem:[#allocation4 + $0x40] ss:$16 sps:$4 sm:$0xff]  }
  0x5e   :  { %v3472_v30 = vcombine.high %v131_v22, %v135_v23  ;;  %v3911_v32 = vld [vmem:[#allocation4 + $0x44] ss:$16 sps:$4 sm:$0xff]   ;;  %v3915_v43 = vld [vmem:[#allocation4 + $0x60] ss:$16 sps:$4 sm:$0xff]   ;;  %v109_v53 = vld [vmem:[#allocation2 + $0x98] sm:$0xff] }
  0x5f   :  { %v3917_v38 = vld [vmem:[#allocation4 + $0x64] ss:$16 sps:$4 sm:$0xff]   ;;  %v3921_v45 = vld [vmem:[#allocation4 + $0x80] ss:$16 sps:$4 sm:$0xff]   ;;  %v113_v54 = vld [vmem:[#allocation2 + $0xb8] sm:$0xff] }
  0x60   :  { %489 = vmatpush1.bf16.msra.mxu1 %v3461_v31  ;;  %575 = vmatpush1.bf16.msra.mxu0 %v3465_v56  ;;  %v3903_v31 = vld [vmem:[#allocation4 + $0x20] ss:$16 sps:$4 sm:$0xff]   ;;  %v3923_v44 = vld [vmem:[#allocation4 + $0x84] ss:$16 sps:$4 sm:$0xff]   ;;  %v121_v61 = vld [vmem:[#allocation2 + $0xf8] sm:$0xff]  ;;  %v3452_v63 = vcombine.high %v109_v53, %v113_v54 }
  0x61   :  { %490 = vmatprep.subr.bf16.mxu1 %v3470_v33  ;;  %576 = vmatprep.subr.bf16.mxu0 %v3474_v60  ;;  %v3471_v33 = vcombine.low %v131_v22, %v135_v23  ;;  %v3929_v49 = vld [vmem:[#allocation4 + $0xa4] ss:$16 sps:$4 sm:$0xff]   ;;  %v117_v60 = vld [vmem:[#allocation2 + $0xd8] sm:$0xff]  ;;  %v3945_v7 = vld [vmem:[#allocation4 + $0x100] ss:$16 sps:$4 sm:$0xff]  }
  0x62   :  { %v3941_v62 = vld [vmem:[#allocation4 + $0xe4] ss:$16 sps:$4 sm:$0xff]   ;;  %v125_v3 = vld [vmem:[#allocation2 + $0x118] sm:$0xff]  ;;  %v3459_v8 = vcombine.low %v117_v60, %v121_v61  ;;  %v3951_v13 = vld [vmem:[#allocation4 + $0x120] ss:$16 sps:$4 sm:$0xff]  }
  0x63   :  { %v3947_v5 = vld [vmem:[#allocation4 + $0x104] ss:$16 sps:$4 sm:$0xff]   ;;  %v145_v16 = vld [vmem:[#allocation2 + $0x1b8] sm:$0xff]  ;;  %v3975_v35 = vld [vmem:[#allocation4 + $0x1a0] ss:$16 sps:$4 sm:$0xff]  }
  0x64   :  { %491 = vmatpush1.bf16.msra.mxu1 %v3469_v39  ;;  %577 = vmatpush1.bf16.msra.mxu0 %v3473_v4  ;;  %v3479_v39 = vcombine.low %v139_v28, %v143_v29  ;;  %v129_v4 = vld [vmem:[#allocation2 + $0x138] sm:$0xff]  ;;  %v3953_v11 = vld [vmem:[#allocation4 + $0x124] ss:$16 sps:$4 sm:$0xff]  }
  0x65   :  { %492 = vmatprep.subr.bf16.mxu1 %v3478_v41  ;;  %578 = vmatprep.subr.bf16.mxu0 %v3482_v6  ;;  %v97_v41 = vld [vmem:[#allocation2 + $0x38] sm:$0xff]  ;;  %v3460_v6 = vcombine.high %v117_v60, %v121_v61  ;;  %v3965_v23 = vld [vmem:[#allocation4 + $0x164] ss:$16 sps:$4 sm:$0xff]  }
  0x66   :  { %v3436_v50 = vcombine.high %v93_v40, %v97_v41  ;;  %v3435_v52 = vcombine.low %v93_v40, %v97_v41  ;;  %v153_v22 = vld [vmem:[#allocation2 + $0x1f8] sm:$0xff] }
  0x67   :  { %v3902_v29 = vld [vmem:[#allocation4 + $0xc] ss:$16 sps:$4 sm:$0xff]   ;;  %v3918_v40 = vld [vmem:[#allocation4 + $0x68] ss:$16 sps:$4 sm:$0xff]  }
  0x68   :  { %493 = vmatpush1.bf16.msra.mxu1 %v3477_v47  ;;  %579 = vmatpush1.bf16.msra.mxu0 %v3481_v12  ;;  %v101_v47 = vld [vmem:[#allocation2 + $0x58] sm:$0xff]  ;;  %v3468_v12 = vcombine.high %v125_v3, %v129_v4 }
  0x69   :  { %494 = vmatprep.subr.bf16.mxu1 %v3486_v51  ;;  %580 = vmatprep.subr.bf16.mxu0 %v3490_v14  ;;  %v3927_v51 = vld [vmem:[#allocation4 + $0xa0] ss:$16 sps:$4 sm:$0xff]   ;;  %v3444_v56 = vcombine.high %v101_v47, %v105_v48  ;;  %v3443_v59 = vcombine.low %v101_v47, %v105_v48  ;;  %v3467_v14 = vcombine.low %v125_v3, %v129_v4  ;;  %v3908_v34 = vld [vmem:[#allocation4 + $0x2c] ss:$16 sps:$4 sm:$0xff]   ;;  %v3966_v61 = vld [vmem:[#allocation4 + $0x168] ss:$16 sps:$4 sm:$0xff]  }
  0x6a   :  { %v3926_v41 = vld [vmem:[#allocation4 + $0x8c] ss:$16 sps:$4 sm:$0xff]   ;;  %v3981_v48 = vld [vmem:[#allocation4 + $0x1c0] ss:$16 sps:$4 sm:$0xff]   ;;  %v3984_v4 = vld [vmem:[#allocation4 + $0x1c8] ss:$16 sps:$4 sm:$0xff]  }
  0x6b   :  { %v3944_v47 = vld [vmem:[#allocation4 + $0xec] ss:$16 sps:$4 sm:$0xff]  }
  0x6c   :  { %495 = vmatpush1.bf16.msra.mxu1 %v3485_v55  ;;  %581 = vmatpush1.bf16.msra.mxu0 %v3489_v19  ;;  %v3935_v55 = vld [vmem:[#allocation4 + $0xc4] ss:$16 sps:$4 sm:$0xff]   ;;  %v3957_v19 = vld [vmem:[#allocation4 + $0x140] ss:$16 sps:$4 sm:$0xff]   ;;  %v3968_v60 = vld [vmem:[#allocation4 + $0x16c] ss:$16 sps:$4 sm:$0xff]  }
  0x6d   :  { %523 = vmatprep.subr.bf16.mxu1 %v3432_v58  ;;  %2319 = vmatprep.subr.bf16.mxu0 %v3899_v20  ;;  %v3933_v58 = vld [vmem:[#allocation4 + $0xc0] ss:$16 sps:$4 sm:$0xff]   ;;  %v3986_v3 = vld [vmem:[#allocation4 + $0x1cc] ss:$16 sps:$4 sm:$0xff]  }
  0x6f   :  { %513 = vmatmul.mubr.bf16.vlgmr.msra.gmra.mrb[0].mxu1 %v4605_v57  ;;  %599 = vmatmul.mubr.bf16.vlgmr.msra.gmra.mrb[0].mxu0 %v4605_v57 }
  0x70   :  { %524 = vmatpush1.bf16.msra.mxu1 %v3431_v1  ;;  %555 = vmatprep.mubr.bf16.mxu1 %v4500_v0  ;;  %v3939_v1 = vld [vmem:[#allocation4 + $0xe0] ss:$16 sps:$4 sm:$0xff]  }
  0x71   :  { %525 = vmatprep.subr.bf16.mxu1 %v3440_v2  ;;  %2320 = vmatpush1.bf16.msra.mxu0 %v3897_v25  ;;  %v3451_v2 = vcombine.low %v109_v53, %v113_v54  ;;  %v3963_v25 = vld [vmem:[#allocation4 + $0x160] ss:$16 sps:$4 sm:$0xff]   ;;  %v3995_v53 = vld [vmem:[#allocation4 + $0x204] ss:$16 sps:$4 sm:$0xff]   ;;  %v3948_v54 = vld [vmem:[#allocation4 + $0x108] ss:$16 sps:$4 sm:$0xff]  }
  0x72   :  { %2321 = vmatprep.subr.bf16.mxu0 %v3905_v26 }
  0x74   :  { %526 = vmatpush1.bf16.msra.mxu1 %v3439_v9  ;;  %v133_v9 = vld [vmem:[#allocation2 + $0x158] sm:$0xff] }
  0x75   :  { %527 = vmatprep.subr.bf16.mxu1 %v3448_v10  ;;  %2322 = vmatpush1.bf16.msra.mxu0 %v3903_v31  ;;  %v137_v10 = vld [vmem:[#allocation2 + $0x178] sm:$0xff] }
  0x76   :  { %2323 = vmatprep.subr.bf16.mxu0 %v3911_v32  ;;  %v3476_v18 = vcombine.high %v133_v9, %v137_v10  ;;  %v3475_v20 = vcombine.low %v133_v9, %v137_v10  ;;  %v3977_v32 = vld [vmem:[#allocation4 + $0x1a4] ss:$16 sps:$4 sm:$0xff]   ;;  %v666_v10 = vlaneseq }
  0x78   :  { %528 = vmatpush1.bf16.msra.mxu1 %v3447_v15  ;;  %v141_v15 = vld [vmem:[#allocation2 + $0x198] sm:$0xff] }
  0x79   :  { %529 = vmatprep.subr.bf16.mxu1 %v3456_v17  ;;  %2324 = vmatpush1.bf16.msra.mxu0 %v3909_v37  ;;  %v3959_v17 = vld [vmem:[#allocation4 + $0x144] ss:$16 sps:$4 sm:$0xff]   ;;  %v3483_v26 = vcombine.low %v141_v15, %v145_v16  ;;  %v3914_v37 = vld [vmem:[#allocation4 + $0x4c] ss:$16 sps:$4 sm:$0xff]  }
  0x7a   :  { %2325 = vmatprep.subr.bf16.mxu0 %v3917_v38  ;;  %v3912_v38 = vld [vmem:[#allocation4 + $0x48] ss:$16 sps:$4 sm:$0xff]  }
  0x7c   :  { %530 = vmatpush1.bf16.msra.mxu1 %v3455_v21  ;;  %v149_v21 = vld [vmem:[#allocation2 + $0x1d8] sm:$0xff] }
  0x7d   :  { %531 = vmatprep.subr.bf16.mxu1 %v3464_v24  ;;  %2326 = vmatpush1.bf16.msra.mxu0 %v3915_v43  ;;  %v3484_v24 = vcombine.high %v141_v15, %v145_v16  ;;  %v3492_v28 = vcombine.high %v149_v21, %v153_v22  ;;  %v3491_v31 = vcombine.low %v149_v21, %v153_v22  ;;  %v3932_v43 = vld [vmem:[#allocation4 + $0xac] ss:$16 sps:$4 sm:$0xff]  }
  0x7e   :  { %2327 = vmatprep.subr.bf16.mxu0 %v3923_v44  ;;  %v3930_v44 = vld [vmem:[#allocation4 + $0xa8] ss:$16 sps:$4 sm:$0xff]  }
  0x80   :  { %532 = vmatpush1.bf16.msra.mxu1 %v3463_v27  ;;  %v3971_v27 = vld [vmem:[#allocation4 + $0x184] ss:$16 sps:$4 sm:$0xff]  }
  0x81   :  { %533 = vmatprep.subr.bf16.mxu1 %v3472_v30  ;;  %2328 = vmatpush1.bf16.msra.mxu0 %v3921_v45  ;;  %v3969_v30 = vld [vmem:[#allocation4 + $0x180] ss:$16 sps:$4 sm:$0xff]   ;;  %v3938_v45 = vld [vmem:[#allocation4 + $0xcc] ss:$16 sps:$4 sm:$0xff]  }
  0x82   :  { %2329 = vmatprep.subr.bf16.mxu0 %v3929_v49  ;;  %v3942_v49 = vld [vmem:[#allocation4 + $0xe8] ss:$16 sps:$4 sm:$0xff]  }
  0x84   :  { %534 = vmatpush1.bf16.msra.mxu1 %v3471_v33  ;;  %v3900_v33 = vld [vmem:[#allocation4 + $0x8] ss:$16 sps:$4 sm:$0xff]  }
  0x85   :  { %535 = vmatprep.subr.bf16.mxu1 %v3480_v36  ;;  %2330 = vmatpush1.bf16.msra.mxu0 %v3927_v51  ;;  %v3906_v36 = vld [vmem:[#allocation4 + $0x28] ss:$16 sps:$4 sm:$0xff]   ;;  %v3950_v51 = vld [vmem:[#allocation4 + $0x10c] ss:$16 sps:$4 sm:$0xff]  }
  0x86   :  { %2331 = vmatprep.subr.bf16.mxu0 %v3935_v55  ;;  %v3956_v55 = vld [vmem:[#allocation4 + $0x12c] ss:$16 sps:$4 sm:$0xff]  }
  0x88   :  { %536 = vmatpush1.bf16.msra.mxu1 %v3479_v39  ;;  %v3920_v39 = vld [vmem:[#allocation4 + $0x6c] ss:$16 sps:$4 sm:$0xff]  }
  0x89   :  { %537 = vmatprep.subr.bf16.mxu1 %v3488_v42  ;;  %2332 = vmatpush1.bf16.msra.mxu0 %v3933_v58  ;;  %v3924_v42 = vld [vmem:[#allocation4 + $0x88] ss:$16 sps:$4 sm:$0xff]   ;;  %v3962_v58 = vld [vmem:[#allocation4 + $0x14c] ss:$16 sps:$4 sm:$0xff]  }
  0x8a   :  { %2333 = vmatprep.subr.bf16.mxu0 %v3941_v62  ;;  %v3974_v62 = vld [vmem:[#allocation4 + $0x18c] ss:$16 sps:$4 sm:$0xff]  }
  0x8c   :  { %538 = vmatpush1.bf16.msra.mxu1 %v3487_v46  ;;  %v3983_v46 = vld [vmem:[#allocation4 + $0x1c4] ss:$16 sps:$4 sm:$0xff]  }
  0x8d   :  { %609 = vmatprep.subr.bf16.mxu1 %v3436_v50  ;;  %2334 = vmatpush1.bf16.msra.mxu0 %v3939_v1  ;;  %v3989_v50 = vld [vmem:[#allocation4 + $0x1e4] ss:$16 sps:$4 sm:$0xff]   ;;  %v3980_v1 = vld [vmem:[#allocation4 + $0x1ac] ss:$16 sps:$4 sm:$0xff]  }
  0x8e   :  { %2335 = vmatprep.subr.bf16.mxu0 %v3947_v5  ;;  %v3992_v5 = vld [vmem:[#allocation4 + $0x1ec] ss:$16 sps:$4 sm:$0xff]  }
  0x8f   :  { %556 = vmatmul.mubr.bf16.vlgmr.msra.gmra.mrb[4].mxu1 %v4605_v57 }
  0x90   :  { %610 = vmatpush1.bf16.msra.mxu1 %v3435_v52  ;;  %641 = vmatprep.mubr.bf16.mxu1 %v4500_v0  ;;  %v3987_v52 = vld [vmem:[#allocation4 + $0x1e0] ss:$16 sps:$4 sm:$0xff]  }
  0x91   :  { %611 = vmatprep.subr.bf16.mxu1 %v3444_v56  ;;  %2336 = vmatpush1.bf16.msra.mxu0 %v3945_v7  ;;  %v3954_v56 = vld [vmem:[#allocation4 + $0x128] ss:$16 sps:$4 sm:$0xff]   ;;  %v3998_v7 = vld [vmem:[#allocation4 + $0x20c] ss:$16 sps:$4 sm:$0xff]  }
  0x92   :  { %2337 = vmatprep.subr.bf16.mxu0 %v3953_v11 }
  0x94   :  { %612 = vmatpush1.bf16.msra.mxu1 %v3443_v59  ;;  %v3960_v59 = vld [vmem:[#allocation4 + $0x148] ss:$16 sps:$4 sm:$0xff]  }
  0x95   :  { %613 = vmatprep.subr.bf16.mxu1 %v3452_v63  ;;  %2338 = vmatpush1.bf16.msra.mxu0 %v3951_v13  ;;  %v3972_v63 = vld [vmem:[#allocation4 + $0x188] ss:$16 sps:$4 sm:$0xff]  }
  0x96   :  { %2339 = vmatprep.subr.bf16.mxu0 %v3959_v17 }
  0x98   :  { %614 = vmatpush1.bf16.msra.mxu1 %v3451_v2  ;;  %v3978_v2 = vld [vmem:[#allocation4 + $0x1a8] ss:$16 sps:$4 sm:$0xff]  }
  0x99   :  { %615 = vmatprep.subr.bf16.mxu1 %v3460_v6  ;;  %2340 = vmatpush1.bf16.msra.mxu0 %v3957_v19  ;;  %v3990_v6 = vld [vmem:[#allocation4 + $0x1e8] ss:$16 sps:$4 sm:$0xff]  }
  0x9a   :  { %2341 = vmatprep.subr.bf16.mxu0 %v3965_v23 }
  0x9c   :  { %616 = vmatpush1.bf16.msra.mxu1 %v3459_v8  ;;  %v4501_v8 = vmov 1966171168  }
  0x9d   :  { %617 = vmatprep.subr.bf16.mxu1 %v3468_v12  ;;  %2342 = vmatpush1.bf16.msra.mxu0 %v3963_v25  ;;  %v664_v9 = vunpack.c.l.s4 %v4501_v8  ;;  %v667_v12 = vshrl.u32 %v666_v10, 7  ;;  %v4032_v10 = vld [vmem:[#allocation4 + $0x2c8] ss:$16 sps:$4 sm:$0xff]  }
  0x9e   :  { %2343 = vmatprep.subr.bf16.mxu0 %v3971_v27 }
  0x9f   :  { %v665_v11 = vunpack.c.0.s8 %v664_v9  ;;  %v4029_v9 = vld [vmem:[#allocation4 + $0x2c0] ss:$16 sps:$4 sm:$0xff]  }
  0xa0   :  { %618 = vmatpush1.bf16.msra.mxu1 %v3467_v14  ;;  %v660_v14 = vld [vmem:[%s4752_s2] sm:$0xff] }
  0xa1   :  { %619 = vmatprep.subr.bf16.mxu1 %v3476_v18  ;;  %2344 = vmatpush1.bf16.msra.mxu0 %v3969_v30  ;;  %v4613_v13 = vsub.s32 %v665_v11, %v667_v12  ;;  %v662_v23 = vcombine.high %v660_v14, %v660_v14 }
  0xa2   :  { %2345 = vmatprep.subr.bf16.mxu0 %v3977_v32 }
  0xa3   :  { %v669_v15 = vrot.slane %v660_v14, %v4613_v13  ;;  %v4040_v14 = vld [vmem:[#allocation4 + $0x2ec] ss:$16 sps:$4 sm:$0xff]  }
  0xa4   :  { %620 = vmatpush1.bf16.msra.mxu1 %v3475_v20  ;;  %v4627_v20 = vsub.s32 0, %v667_v12  ;;  %v4037_v12 = vld [vmem:[#allocation4 + $0x2e4] ss:$16 sps:$4 sm:$0xff]  }
  0xa5   :  { %621 = vmatprep.subr.bf16.mxu1 %v3484_v24  ;;  %2346 = vmatpush1.bf16.msra.mxu0 %v3975_v35  ;;  %v677_v16 = vcombine.high %v669_v15, %v669_v15  ;;  %v4620_v17 = vrot.slane %v669_v15, %v4613_v13 }
  0xa6   :  { %2347 = vmatprep.subr.bf16.mxu0 %v3983_v46 }
  0xa7   :  { %v4623_v18 = vrot.slane %v677_v16, %v4613_v13  ;;  %v712_v19 = vpack.i.b16 %v4620_v17, %v4620_v17 }
  0xa8   :  { %622 = vmatpush1.bf16.msra.mxu1 %v3483_v26 }
  0xa9   :  { %623 = vmatprep.subr.bf16.mxu1 %v3492_v28  ;;  %2348 = vmatpush1.bf16.msra.mxu0 %v3981_v48  ;;  %v719_v21 = vpack.i.b16 %v4623_v18, %v4623_v18  ;;  %v717_v25 = vrot.slane %v712_v19, %v4627_v20 }
  0xaa   :  { %2349 = vmatprep.subr.bf16.mxu0 %v3989_v50  ;;  %v4008_v50 = vld [vmem:[#allocation4 + $0x248] ss:$16 sps:$4 sm:$0xff]  }
  0xab   :  { %v724_v27 = vrot.slane %v719_v21, %v4627_v20 }
  0xac   :  { %624 = vmatpush1.bf16.msra.mxu1 %v3491_v31  ;;  %v4634_v31 = vrot.slane %v662_v23, %v4613_v13  ;;  %v4038_v23 = vld [vmem:[#allocation4 + $0x2e8] ss:$16 sps:$4 sm:$0xff]  }
  0xad   :  { %2491 = vmatprep.subr.bf16.mxu1 %v3902_v29  ;;  %2350 = vmatpush1.bf16.msra.mxu0 %v3987_v52 }
  0xae   :  { %2362 = vmatprep.subr.bf16.mxu0 %v3995_v53  ;;  %v4013_v53 = vld [vmem:[#allocation4 + $0x264] ss:$16 sps:$4 sm:$0xff]  }
  0xaf   :  { %642 = vmatmul.mubr.bf16.vlgmr.msra.gmra.mrb[8].mxu1 %v4605_v57  ;;  %v3936_v57 = vld [vmem:[#allocation4 + $0xc8] ss:$16 sps:$4 sm:$0xff]  }
  0xb0   :  { %2492 = vmatpush1.bf16.msra.mxu1 %v3900_v33 }
  0xb1   :  { %2493 = vmatprep.subr.bf16.mxu1 %v3908_v34  ;;  %v4638_v34 = vrot.slane %v4634_v31, %v4613_v13 }
  0xb4   :  { %2494 = vmatpush1.bf16.msra.mxu1 %v3906_v36  ;;  %v3993_v36 = vld [vmem:[#allocation4 + $0x200] ss:$16 sps:$4 sm:$0xff]  }
  0xb5   :  { %2495 = vmatprep.subr.bf16.mxu1 %v3914_v37  ;;  %v3996_v37 = vld [vmem:[#allocation4 + $0x208] ss:$16 sps:$4 sm:$0xff]  }
  0xb8   :  { %2496 = vmatpush1.bf16.msra.mxu1 %v3912_v38 }
  0xb9   :  { %2497 = vmatprep.subr.bf16.mxu1 %v3920_v39  ;;  %v4001_v39 = vld [vmem:[#allocation4 + $0x224] ss:$16 sps:$4 sm:$0xff]  }
  0xbc   :  { %2498 = vmatpush1.bf16.msra.mxu1 %v3918_v40  ;;  %v4004_v40 = vld [vmem:[#allocation4 + $0x22c] ss:$16 sps:$4 sm:$0xff]  }
  0xbd   :  { %2499 = vmatprep.subr.bf16.mxu1 %v3926_v41  ;;  %v740_v41 = vpack.i.b16 %v4638_v34, %v4638_v34 }
  0xc0   :  { %2500 = vmatpush1.bf16.msra.mxu1 %v3924_v42  ;;  %v3999_v42 = vld [vmem:[#allocation4 + $0x220] ss:$16 sps:$4 sm:$0xff]  }
  0xc1   :  { %2501 = vmatprep.subr.bf16.mxu1 %v3932_v43  ;;  %v4002_v43 = vld [vmem:[#allocation4 + $0x228] ss:$16 sps:$4 sm:$0xff]  }
  0xc4   :  { %2502 = vmatpush1.bf16.msra.mxu1 %v3930_v44  ;;  %v4007_v44 = vld [vmem:[#allocation4 + $0x244] ss:$16 sps:$4 sm:$0xff]  }
  0xc5   :  { %2503 = vmatprep.subr.bf16.mxu1 %v3938_v45  ;;  %v4010_v45 = vld [vmem:[#allocation4 + $0x24c] ss:$16 sps:$4 sm:$0xff]  }
  0xc8   :  { %2504 = vmatpush1.bf16.msra.mxu1 %v3936_v57 }
  0xc9   :  { %2505 = vmatprep.subr.bf16.mxu1 %v3944_v47  ;;  %v745_v47 = vrot.slane %v740_v41, %v4627_v20  ;;  %v4061_v41 = vld [vmem:[#allocation4 + $0x364] ss:$16 sps:$4 sm:$0xff]  }
  0xcc   :  { %2506 = vmatpush1.bf16.msra.mxu1 %v3942_v49  ;;  %v4005_v49 = vld [vmem:[#allocation4 + $0x240] ss:$16 sps:$4 sm:$0xff]  }
  0xcd   :  { %2507 = vmatprep.subr.bf16.mxu1 %v3950_v51 }
  0xd0   :  { %2508 = vmatpush1.bf16.msra.mxu1 %v3948_v54  ;;  %v4016_v54 = vld [vmem:[#allocation4 + $0x26c] ss:$16 sps:$4 sm:$0xff]  }
  0xd1   :  { %2509 = vmatprep.subr.bf16.mxu1 %v3956_v55 }
  0xd4   :  { %2510 = vmatpush1.bf16.msra.mxu1 %v3954_v56 }
  0xd5   :  { %2511 = vmatprep.subr.bf16.mxu1 %v3962_v58  ;;  %v4011_v58 = vld [vmem:[#allocation4 + $0x260] ss:$16 sps:$4 sm:$0xff]  }
  0xd8   :  { %2512 = vmatpush1.bf16.msra.mxu1 %v3960_v59  ;;  %v4014_v59 = vld [vmem:[#allocation4 + $0x268] ss:$16 sps:$4 sm:$0xff]  }
  0xd9   :  { %2513 = vmatprep.subr.bf16.mxu1 %v3968_v60  ;;  %v4019_v60 = vld [vmem:[#allocation4 + $0x284] ss:$16 sps:$4 sm:$0xff]  }
  0xdc   :  { %2514 = vmatpush1.bf16.msra.mxu1 %v3966_v61  ;;  %v4022_v61 = vld [vmem:[#allocation4 + $0x28c] ss:$16 sps:$4 sm:$0xff]  }
  0xdd   :  { %2515 = vmatprep.subr.bf16.mxu1 %v3974_v62  ;;  %v4017_v62 = vld [vmem:[#allocation4 + $0x280] ss:$16 sps:$4 sm:$0xff]  }
  0xe0   :  { %2516 = vmatpush1.bf16.msra.mxu1 %v3972_v63  ;;  %v4020_v63 = vld [vmem:[#allocation4 + $0x288] ss:$16 sps:$4 sm:$0xff]  }
  0xe1   :  { %2517 = vmatprep.subr.bf16.mxu1 %v3980_v1  ;;  %v4025_v1 = vld [vmem:[#allocation4 + $0x2a4] ss:$16 sps:$4 sm:$0xff]  }
  0xe4   :  { %2518 = vmatpush1.bf16.msra.mxu1 %v3978_v2  ;;  %v4028_v2 = vld [vmem:[#allocation4 + $0x2ac] ss:$16 sps:$4 sm:$0xff]  }
  0xe5   :  { %2519 = vmatprep.subr.bf16.mxu1 %v3986_v3  ;;  %v709_v3 = vcombine.high %v4623_v18, %v4623_v18 }
  0xe7   :  { %v733_v8 = vpack.i.b16 %v709_v3, %v709_v3 }
  0xe8   :  { %2520 = vmatpush1.bf16.msra.mxu1 %v3984_v4  ;;  %v4023_v4 = vld [vmem:[#allocation4 + $0x2a0] ss:$16 sps:$4 sm:$0xff]  }
  0xe9   :  { %2521 = vmatprep.subr.bf16.mxu1 %v3992_v5  ;;  %v4026_v5 = vld [vmem:[#allocation4 + $0x2a8] ss:$16 sps:$4 sm:$0xff]   ;;  %v738_v18 = vrot.slane %v733_v8, %v4627_v20 }
  0xec   :  { %2522 = vmatpush1.bf16.msra.mxu1 %v3990_v6  ;;  %v4031_v6 = vld [vmem:[#allocation4 + $0x2c4] ss:$16 sps:$4 sm:$0xff]  }
  0xed   :  { %2534 = vmatprep.subr.bf16.mxu1 %v3998_v7  ;;  %v4034_v7 = vld [vmem:[#allocation4 + $0x2cc] ss:$16 sps:$4 sm:$0xff]  }
 0x142   :  { %v514_v22 = vpop.f32.mrb[0].mxu1  ;;  %v600_v57 = vpop.f32.mrb[0].mxu0 }
 0x143   :  { %v516_v24 = vpop.f32.mrb[1].mxu1  ;;  %v4644_v46 = vpop.f32.mrb[1].mxu0 }
 0x144   :  { %v518_v26 = vpop.f32.mrb[2].mxu1  ;;  %v604_v48 = vpop.f32.mrb[2].mxu0 }
 0x145   :  { %v652_v28 = vpack.c.bf16 %v518_v26, %v514_v22  ;;  %v520_v29 = vpop.f32.mrb[3].mxu1  ;;  %v656_v51 = vpack.c.bf16 %v604_v48, %v600_v57  ;;  %v4647_v52 = vpop.f32.mrb[3].mxu0  ;;  %v4035_v22 = vld [vmem:[#allocation4 + $0x2e0] ss:$16 sps:$4 sm:$0xff]   ;;  %v4046_v26 = vld [vmem:[#allocation4 + $0x30c] ss:$16 sps:$4 sm:$0xff]  }
 0x146   :  { %v653_v30 = vpack.c.bf16 %v520_v29, %v516_v24  ;;  %v657_v55 = vpack.c.bf16 %v4647_v52, %v4644_v46  ;;  %v4044_v29 = vld [vmem:[#allocation4 + $0x308] ss:$16 sps:$4 sm:$0xff]   ;;  %v4070_v57 = vld [vmem:[#allocation4 + $0x38c] ss:$16 sps:$4 sm:$0xff]   ;;  %v4065_v48 = vld [vmem:[#allocation4 + $0x380] ss:$16 sps:$4 sm:$0xff]  }
 0x147   :  { %v767_v32 = vadd.bf16 %v717_v25, %v652_v28  ;;  %v4651_v56 = vadd.bf16 %v745_v47, %v656_v51  ;;  %v4043_v25 = vld [vmem:[#allocation4 + $0x304] ss:$16 sps:$4 sm:$0xff]   ;;  %v4041_v28 = vld [vmem:[#allocation4 + $0x300] ss:$16 sps:$4 sm:$0xff]   ;;  %v678_v47 = vcombine.high %v4634_v31, %v4634_v31  ;;  %v4076_v51 = vld [vmem:[#allocation4 + $0x3ac] ss:$16 sps:$4 sm:$0xff]   ;;  %v708_v31 = vcombine.high %v4638_v34, %v4638_v34 }
 0x148   :  { %v768_v33 = vadd.bf16 %v724_v27, %v653_v30  ;;  %v4088_v34 = vld [vmem:[#allocation4 + $0x3ec] ss:$16 sps:$4 sm:$0xff]   ;;  %v4103_v46 = vld [vmem:[#allocation4 + $0x444] ss:$16 sps:$4 sm:$0xff]  }
 0x149   :  { %v775_v38 = vmax.bf16 %v4500_v0, %v767_v32  ;;  %v4049_v32 = vld [vmem:[#allocation4 + $0x324] ss:$16 sps:$4 sm:$0xff]   ;;  %v4106_v52 = vld [vmem:[#allocation4 + $0x44c] ss:$16 sps:$4 sm:$0xff]  }
 0x14a   :  { %v776_v35 = vmax.bf16 %v4500_v0, %v768_v33  ;;  %v4052_v33 = vld [vmem:[#allocation4 + $0x32c] ss:$16 sps:$4 sm:$0xff]  }
 0x14c   :  { %2351 = vmatprep.mubr.bf16.mxu0 %v776_v35  ;;  %2523 = vmatprep.mubr.bf16.mxu1 %v776_v35  ;;  %v4047_v35 = vld [vmem:[#allocation4 + $0x320] ss:$16 sps:$4 sm:$0xff]  }
 0x14d   :  { %2352 = vmatmul.mubr.bf16.vlgmr.msra.gmra.mrb[4].mxu0 %v775_v38  ;;  %2524 = vmatmul.mubr.bf16.vlgmr.msra.gmra.mrb[12].mxu1 %v775_v38  ;;  %v4058_v38 = vld [vmem:[#allocation4 + $0x34c] ss:$16 sps:$4 sm:$0xff]  }
 0x14e   :  { %2363 = vmatpush1.bf16.msra.mxu0 %v3993_v36  ;;  %2535 = vmatpush1.bf16.msra.mxu1 %v3996_v37  ;;  %v4050_v36 = vld [vmem:[#allocation4 + $0x328] ss:$16 sps:$4 sm:$0xff]   ;;  %v4055_v37 = vld [vmem:[#allocation4 + $0x344] ss:$16 sps:$4 sm:$0xff]  }
 0x14f   :  { %2364 = vmatprep.subr.bf16.mxu0 %v4001_v39  ;;  %2536 = vmatprep.subr.bf16.mxu1 %v4004_v40  ;;  %v4053_v39 = vld [vmem:[#allocation4 + $0x340] ss:$16 sps:$4 sm:$0xff]   ;;  %v4056_v40 = vld [vmem:[#allocation4 + $0x348] ss:$16 sps:$4 sm:$0xff]  }
 0x152   :  { %2365 = vmatpush1.bf16.msra.mxu0 %v3999_v42  ;;  %2537 = vmatpush1.bf16.msra.mxu1 %v4002_v43  ;;  %v4064_v42 = vld [vmem:[#allocation4 + $0x36c] ss:$16 sps:$4 sm:$0xff]   ;;  %v4059_v43 = vld [vmem:[#allocation4 + $0x360] ss:$16 sps:$4 sm:$0xff]  }
 0x153   :  { %2366 = vmatprep.subr.bf16.mxu0 %v4007_v44  ;;  %2538 = vmatprep.subr.bf16.mxu1 %v4010_v45  ;;  %v4062_v44 = vld [vmem:[#allocation4 + $0x368] ss:$16 sps:$4 sm:$0xff]   ;;  %v4067_v45 = vld [vmem:[#allocation4 + $0x384] ss:$16 sps:$4 sm:$0xff]  }
 0x156   :  { %2367 = vmatpush1.bf16.msra.mxu0 %v4005_v49  ;;  %2539 = vmatpush1.bf16.msra.mxu1 %v4008_v50  ;;  %v4068_v49 = vld [vmem:[#allocation4 + $0x388] ss:$16 sps:$4 sm:$0xff]   ;;  %v4073_v50 = vld [vmem:[#allocation4 + $0x3a4] ss:$16 sps:$4 sm:$0xff]  }
 0x157   :  { %2368 = vmatprep.subr.bf16.mxu0 %v4013_v53  ;;  %2540 = vmatprep.subr.bf16.mxu1 %v4016_v54  ;;  %v707_v53 = vcombine.high %v4620_v17, %v4620_v17  ;;  %v4668_v54 = vrot.slane %v678_v47, %v4613_v13  ;;  %v4077_v17 = vld [vmem:[#allocation4 + $0x3c0] ss:$16 sps:$4 sm:$0xff]   ;;  %v4130_v47 = vld [vmem:[#allocation4 + $0x4cc] ss:$16 sps:$4 sm:$0xff]  }
 0x15a   :  { %2369 = vmatpush1.bf16.msra.mxu0 %v4011_v58  ;;  %2541 = vmatpush1.bf16.msra.mxu1 %v4014_v59  ;;  %v4071_v58 = vld [vmem:[#allocation4 + $0x3a0] ss:$16 sps:$4 sm:$0xff]   ;;  %v4074_v59 = vld [vmem:[#allocation4 + $0x3a8] ss:$16 sps:$4 sm:$0xff]  }
 0x15b   :  { %2370 = vmatprep.subr.bf16.mxu0 %v4019_v60  ;;  %2542 = vmatprep.subr.bf16.mxu1 %v4022_v61  ;;  %v726_v60 = vpack.i.b16 %v707_v53, %v707_v53  ;;  %v4079_v61 = vld [vmem:[#allocation4 + $0x3c4] ss:$16 sps:$4 sm:$0xff]   ;;  %v4131_v53 = vld [vmem:[#allocation4 + $0x4e0] ss:$16 sps:$4 sm:$0xff]  }
 0x15e   :  { %2371 = vmatpush1.bf16.msra.mxu0 %v4017_v62  ;;  %2543 = vmatpush1.bf16.msra.mxu1 %v4020_v63  ;;  %v4082_v62 = vld [vmem:[#allocation4 + $0x3cc] ss:$16 sps:$4 sm:$0xff]   ;;  %v747_v63 = vpack.i.b16 %v4668_v54, %v4668_v54 }
 0x15f   :  { %2372 = vmatprep.subr.bf16.mxu0 %v4025_v1  ;;  %2544 = vmatprep.subr.bf16.mxu1 %v4028_v2  ;;  %v754_v1 = vpack.i.b16 %v708_v31, %v708_v31  ;;  %v4080_v2 = vld [vmem:[#allocation4 + $0x3c8] ss:$16 sps:$4 sm:$0xff]   ;;  %v4142_v31 = vld [vmem:[#allocation4 + $0x50c] ss:$16 sps:$4 sm:$0xff]  }
 0x160   :  { %v752_v8 = vrot.slane %v747_v63, %v4627_v20  ;;  %v4148_v63 = vld [vmem:[#allocation4 + $0x52c] ss:$16 sps:$4 sm:$0xff]  }
 0x162   :  { %2373 = vmatpush1.bf16.msra.mxu0 %v4023_v4  ;;  %2545 = vmatpush1.bf16.msra.mxu1 %v4026_v5  ;;  %v4655_v11 = vpop.f32.mrb[4].mxu1  ;;  %v731_v4 = vrot.slane %v726_v60, %v4627_v20  ;;  %v4085_v5 = vld [vmem:[#allocation4 + $0x3e4] ss:$16 sps:$4 sm:$0xff]   ;;  %v4137_v60 = vld [vmem:[#allocation4 + $0x500] ss:$16 sps:$4 sm:$0xff]  }
 0x163   :  { %2374 = vmatprep.subr.bf16.mxu0 %v4031_v6  ;;  %2546 = vmatprep.subr.bf16.mxu1 %v4034_v7  ;;  %v559_v15 = vpop.f32.mrb[5].mxu1  ;;  %v759_v7 = vrot.slane %v754_v1, %v4627_v20  ;;  %v4143_v1 = vld [vmem:[#allocation4 + $0x520] ss:$16 sps:$4 sm:$0xff]  }
 0x164   :  { %v4657_v16 = vpop.f32.mrb[6].mxu1 }
 0x165   :  { %v654_v19 = vpack.c.bf16 %v4657_v16, %v4655_v11  ;;  %v563_v21 = vpop.f32.mrb[7].mxu1  ;;  %v4097_v11 = vld [vmem:[#allocation4 + $0x424] ss:$16 sps:$4 sm:$0xff]   ;;  %v4100_v16 = vld [vmem:[#allocation4 + $0x42c] ss:$16 sps:$4 sm:$0xff]  }
 0x166   :  { %2375 = vmatpush1.bf16.msra.mxu0 %v4029_v9  ;;  %2547 = vmatpush1.bf16.msra.mxu1 %v4032_v10  ;;  %v655_v24 = vpack.c.bf16 %v563_v21, %v559_v15  ;;  %v4086_v15 = vld [vmem:[#allocation4 + $0x3e8] ss:$16 sps:$4 sm:$0xff]  }
 0x167   :  { %2376 = vmatprep.subr.bf16.mxu0 %v4037_v12  ;;  %2548 = vmatprep.subr.bf16.mxu1 %v4040_v14  ;;  %v4083_v14 = vld [vmem:[#allocation4 + $0x3e0] ss:$16 sps:$4 sm:$0xff]   ;;  %v769_v21 = vadd.bf16 %v731_v4, %v654_v19 }
 0x168   :  { %v770_v27 = vadd.bf16 %v738_v18, %v655_v24  ;;  %v4149_v4 = vld [vmem:[#allocation4 + $0x540] ss:$16 sps:$4 sm:$0xff]  }
 0x16a   :  { %2377 = vmatpush1.bf16.msra.mxu0 %v4035_v22  ;;  %2549 = vmatpush1.bf16.msra.mxu1 %v4038_v23  ;;  %v778_v30 = vmax.bf16 %v4500_v0, %v770_v27  ;;  %v4091_v22 = vld [vmem:[#allocation4 + $0x404] ss:$16 sps:$4 sm:$0xff]   ;;  %v4094_v23 = vld [vmem:[#allocation4 + $0x40c] ss:$16 sps:$4 sm:$0xff]   ;;  %v4092_v27 = vld [vmem:[#allocation4 + $0x408] ss:$16 sps:$4 sm:$0xff]  }
 0x16b   :  { %2378 = vmatprep.subr.bf16.mxu0 %v4043_v25  ;;  %2550 = vmatprep.subr.bf16.mxu1 %v4046_v26  ;;  %v772_v25 = vadd.bf16 %v752_v8, %v657_v55  ;;  %v4089_v26 = vld [vmem:[#allocation4 + $0x400] ss:$16 sps:$4 sm:$0xff]  }
 0x16c   :  { %2394 = vmatprep.mubr.bf16.mxu0 %v778_v30  ;;  %2566 = vmatprep.mubr.bf16.mxu1 %v778_v30  ;;  %v4098_v30 = vld [vmem:[#allocation4 + $0x428] ss:$16 sps:$4 sm:$0xff]   ;;  %v4101_v55 = vld [vmem:[#allocation4 + $0x440] ss:$16 sps:$4 sm:$0xff]  }
 0x16d   :  { %v780_v19 = vmax.bf16 %v4500_v0, %v772_v25  ;;  %v4155_v8 = vld [vmem:[#allocation4 + $0x560] ss:$16 sps:$4 sm:$0xff]   ;;  %v710_v25 = vcombine.high %v4668_v54, %v4668_v54 }
 0x16e   :  { %2379 = vmatpush1.bf16.msra.mxu0 %v4041_v28  ;;  %2551 = vmatpush1.bf16.msra.mxu1 %v4044_v29  ;;  %v777_v28 = vmax.bf16 %v4500_v0, %v769_v21  ;;  %v4095_v29 = vld [vmem:[#allocation4 + $0x420] ss:$16 sps:$4 sm:$0xff]   ;;  %v4164_v21 = vld [vmem:[#allocation4 + $0x588] ss:$16 sps:$4 sm:$0xff]  }
 0x16f   :  { %2380 = vmatprep.subr.bf16.mxu0 %v4049_v32  ;;  %2552 = vmatprep.subr.bf16.mxu1 %v4052_v33  ;;  %v4104_v32 = vld [vmem:[#allocation4 + $0x448] ss:$16 sps:$4 sm:$0xff]   ;;  %v4109_v33 = vld [vmem:[#allocation4 + $0x464] ss:$16 sps:$4 sm:$0xff]   ;;  %v4180_v54 = vld [vmem:[#allocation4 + $0x5e0] ss:$16 sps:$4 sm:$0xff]  }
 0x172   :  { %2381 = vmatpush1.bf16.msra.mxu0 %v4047_v35  ;;  %2553 = vmatpush1.bf16.msra.mxu1 %v4050_v36  ;;  %v4112_v35 = vld [vmem:[#allocation4 + $0x46c] ss:$16 sps:$4 sm:$0xff]   ;;  %v4107_v36 = vld [vmem:[#allocation4 + $0x460] ss:$16 sps:$4 sm:$0xff]  }
 0x173   :  { %2382 = vmatprep.subr.bf16.mxu0 %v4055_v37  ;;  %2554 = vmatprep.subr.bf16.mxu1 %v4058_v38  ;;  %v4110_v37 = vld [vmem:[#allocation4 + $0x468] ss:$16 sps:$4 sm:$0xff]   ;;  %v4115_v38 = vld [vmem:[#allocation4 + $0x484] ss:$16 sps:$4 sm:$0xff]  }
 0x176   :  { %2383 = vmatpush1.bf16.msra.mxu0 %v4053_v39  ;;  %2555 = vmatpush1.bf16.msra.mxu1 %v4056_v40  ;;  %v4118_v39 = vld [vmem:[#allocation4 + $0x48c] ss:$16 sps:$4 sm:$0xff]   ;;  %v4113_v40 = vld [vmem:[#allocation4 + $0x480] ss:$16 sps:$4 sm:$0xff]  }
 0x177   :  { %2384 = vmatprep.subr.bf16.mxu0 %v4061_v41  ;;  %2556 = vmatprep.subr.bf16.mxu1 %v4064_v42  ;;  %v4116_v41 = vld [vmem:[#allocation4 + $0x488] ss:$16 sps:$4 sm:$0xff]   ;;  %v4121_v42 = vld [vmem:[#allocation4 + $0x4a4] ss:$16 sps:$4 sm:$0xff]  }
 0x17a   :  { %2385 = vmatpush1.bf16.msra.mxu0 %v4059_v43  ;;  %2557 = vmatpush1.bf16.msra.mxu1 %v4062_v44  ;;  %v4124_v43 = vld [vmem:[#allocation4 + $0x4ac] ss:$16 sps:$4 sm:$0xff]   ;;  %v4119_v44 = vld [vmem:[#allocation4 + $0x4a0] ss:$16 sps:$4 sm:$0xff]  }
 0x17b   :  { %2386 = vmatprep.subr.bf16.mxu0 %v4067_v45  ;;  %2558 = vmatprep.subr.bf16.mxu1 %v4070_v57  ;;  %v4122_v45 = vld [vmem:[#allocation4 + $0x4a8] ss:$16 sps:$4 sm:$0xff]   ;;  %v4127_v57 = vld [vmem:[#allocation4 + $0x4c4] ss:$16 sps:$4 sm:$0xff]  }
 0x17e   :  { %2387 = vmatpush1.bf16.msra.mxu0 %v4065_v48  ;;  %2559 = vmatpush1.bf16.msra.mxu1 %v4068_v49  ;;  %v4125_v48 = vld [vmem:[#allocation4 + $0x4c0] ss:$16 sps:$4 sm:$0xff]   ;;  %v4128_v49 = vld [vmem:[#allocation4 + $0x4c8] ss:$16 sps:$4 sm:$0xff]  }
 0x17f   :  { %2388 = vmatprep.subr.bf16.mxu0 %v4073_v50  ;;  %2560 = vmatprep.subr.bf16.mxu1 %v4076_v51  ;;  %v4133_v50 = vld [vmem:[#allocation4 + $0x4e4] ss:$16 sps:$4 sm:$0xff]   ;;  %v4136_v51 = vld [vmem:[#allocation4 + $0x4ec] ss:$16 sps:$4 sm:$0xff]  }
 0x182   :  { %2389 = vmatpush1.bf16.msra.mxu0 %v4071_v58  ;;  %2561 = vmatpush1.bf16.msra.mxu1 %v4074_v59  ;;  %v643_v3 = vpop.f32.mrb[8].mxu1  ;;  %v4134_v58 = vld [vmem:[#allocation4 + $0x4e8] ss:$16 sps:$4 sm:$0xff]   ;;  %v4139_v59 = vld [vmem:[#allocation4 + $0x504] ss:$16 sps:$4 sm:$0xff]  }
 0x183   :  { %2390 = vmatprep.subr.bf16.mxu0 %v4079_v61  ;;  %2562 = vmatprep.subr.bf16.mxu1 %v4082_v62  ;;  %v4675_v6 = vpop.f32.mrb[9].mxu1  ;;  %v4140_v61 = vld [vmem:[#allocation4 + $0x508] ss:$16 sps:$4 sm:$0xff]   ;;  %v4145_v62 = vld [vmem:[#allocation4 + $0x524] ss:$16 sps:$4 sm:$0xff]  }
 0x184   :  { %v647_v9 = vpop.f32.mrb[10].mxu1 }
 0x185   :  { %v658_v10 = vpack.c.bf16 %v647_v9, %v643_v3  ;;  %v4679_v12 = vpop.f32.mrb[11].mxu1  ;;  %v4154_v3 = vld [vmem:[#allocation4 + $0x54c] ss:$16 sps:$4 sm:$0xff]   ;;  %v4158_v9 = vld [vmem:[#allocation4 + $0x568] ss:$16 sps:$4 sm:$0xff]  }
 0x186   :  { %2391 = vmatpush1.bf16.msra.mxu0 %v4077_v17  ;;  %2563 = vmatpush1.bf16.msra.mxu1 %v4080_v2  ;;  %v659_v18 = vpack.c.bf16 %v4679_v12, %v4675_v6  ;;  %v4146_v17 = vld [vmem:[#allocation4 + $0x528] ss:$16 sps:$4 sm:$0xff]   ;;  %v4151_v2 = vld [vmem:[#allocation4 + $0x544] ss:$16 sps:$4 sm:$0xff]  }
 0x187   :  { %2392 = vmatprep.subr.bf16.mxu0 %v4085_v5  ;;  %2564 = vmatprep.subr.bf16.mxu1 %v4088_v34  ;;  %v4686_v24 = vadd.bf16 %v759_v7, %v658_v10  ;;  %v4152_v5 = vld [vmem:[#allocation4 + $0x548] ss:$16 sps:$4 sm:$0xff]   ;;  %v4157_v34 = vld [vmem:[#allocation4 + $0x564] ss:$16 sps:$4 sm:$0xff]   ;;  %v4160_v7 = vld [vmem:[#allocation4 + $0x56c] ss:$16 sps:$4 sm:$0xff]  }
 0x188   :  { %v4163_v10 = vld [vmem:[#allocation4 + $0x584] ss:$16 sps:$4 sm:$0xff]   ;;  %v4195_v6 = vld [vmem:[#allocation4 + $0x628] ss:$16 sps:$4 sm:$0xff]  }
 0x189   :  { %v4200_v12 = vld [vmem:[#allocation4 + $0x644] ss:$16 sps:$4 sm:$0xff]  }
 0x18a   :  { %2393 = vmatpush1.bf16.msra.mxu0 %v4083_v14  ;;  %2565 = vmatpush1.bf16.msra.mxu1 %v4086_v15  ;;  %v4166_v14 = vld [vmem:[#allocation4 + $0x58c] ss:$16 sps:$4 sm:$0xff]   ;;  %v4161_v15 = vld [vmem:[#allocation4 + $0x580] ss:$16 sps:$4 sm:$0xff]  }
 0x18b   :  { %2405 = vmatprep.subr.bf16.mxu0 %v4091_v22  ;;  %2577 = vmatprep.subr.bf16.mxu1 %v4094_v23  ;;  %v4169_v22 = vld [vmem:[#allocation4 + $0x5a4] ss:$16 sps:$4 sm:$0xff]   ;;  %v4172_v23 = vld [vmem:[#allocation4 + $0x5ac] ss:$16 sps:$4 sm:$0xff]  }
 0x18d   :  { %2395 = vmatmul.mubr.bf16.vlgmr.msra.gmra.mrb[4].mxu0 %v777_v28  ;;  %2567 = vmatmul.mubr.bf16.vlgmr.msra.gmra.mrb[12].mxu1 %v777_v28  ;;  %v4176_v28 = vld [vmem:[#allocation4 + $0x5c4] ss:$16 sps:$4 sm:$0xff]  }
 0x18e   :  { %2406 = vmatpush1.bf16.msra.mxu0 %v4089_v26  ;;  %2578 = vmatpush1.bf16.msra.mxu1 %v4092_v27  ;;  %v4167_v26 = vld [vmem:[#allocation4 + $0x5a0] ss:$16 sps:$4 sm:$0xff]   ;;  %v4170_v27 = vld [vmem:[#allocation4 + $0x5a8] ss:$16 sps:$4 sm:$0xff]  }
 0x18f   :  { %2407 = vmatprep.subr.bf16.mxu0 %v4097_v11  ;;  %2579 = vmatprep.subr.bf16.mxu1 %v4100_v16  ;;  %v4179_v11 = vld [vmem:[#allocation4 + $0x5cc] ss:$16 sps:$4 sm:$0xff]   ;;  %v761_v16 = vpack.i.b16 %v710_v25, %v710_v25  ;;  %v4254_v25 = vld [vmem:[#allocation4 + $0x764] ss:$16 sps:$4 sm:$0xff]  }
 0x190   :  { %2437 = vmatprep.mubr.bf16.mxu0 %v780_v19  ;;  %2609 = vmatprep.mubr.bf16.mxu1 %v780_v19  ;;  %v4174_v19 = vld [vmem:[#allocation4 + $0x5c0] ss:$16 sps:$4 sm:$0xff]  }
 0x192   :  { %2408 = vmatpush1.bf16.msra.mxu0 %v4095_v29  ;;  %2580 = vmatpush1.bf16.msra.mxu1 %v4098_v30  ;;  %v4177_v29 = vld [vmem:[#allocation4 + $0x5c8] ss:$16 sps:$4 sm:$0xff]   ;;  %v4182_v30 = vld [vmem:[#allocation4 + $0x5e4] ss:$16 sps:$4 sm:$0xff]  }
 0x193   :  { %2409 = vmatprep.subr.bf16.mxu0 %v4103_v46  ;;  %2581 = vmatprep.subr.bf16.mxu1 %v4106_v52  ;;  %v4185_v46 = vld [vmem:[#allocation4 + $0x5ec] ss:$16 sps:$4 sm:$0xff]   ;;  %v766_v52 = vrot.slane %v761_v16, %v4627_v20 }
 0x194   :  { %v4263_v16 = vld [vmem:[#allocation4 + $0x78c] ss:$16 sps:$4 sm:$0xff]  }
 0x196   :  { %2410 = vmatpush1.bf16.msra.mxu0 %v4101_v55  ;;  %2582 = vmatpush1.bf16.msra.mxu1 %v4104_v32  ;;  %v4183_v55 = vld [vmem:[#allocation4 + $0x5e8] ss:$16 sps:$4 sm:$0xff]   ;;  %v4188_v32 = vld [vmem:[#allocation4 + $0x604] ss:$16 sps:$4 sm:$0xff]  }
 0x197   :  { %2411 = vmatprep.subr.bf16.mxu0 %v4109_v33  ;;  %2583 = vmatprep.subr.bf16.mxu1 %v4112_v35  ;;  %v4191_v33 = vld [vmem:[#allocation4 + $0x60c] ss:$16 sps:$4 sm:$0xff]   ;;  %v774_v35 = vadd.bf16 %v766_v52, %v659_v18  ;;  %v4264_v52 = vld [vmem:[#allocation4 + $0x7a0] ss:$16 sps:$4 sm:$0xff]  }
 0x198   :  { %v4203_v18 = vld [vmem:[#allocation4 + $0x64c] ss:$16 sps:$4 sm:$0xff]  }
 0x19a   :  { %2412 = vmatpush1.bf16.msra.mxu0 %v4107_v36  ;;  %2584 = vmatpush1.bf16.msra.mxu1 %v4110_v37  ;;  %v4186_v36 = vld [vmem:[#allocation4 + $0x600] ss:$16 sps:$4 sm:$0xff]   ;;  %v4189_v37 = vld [vmem:[#allocation4 + $0x608] ss:$16 sps:$4 sm:$0xff]  }
 0x19b   :  { %2413 = vmatprep.subr.bf16.mxu0 %v4115_v38  ;;  %2585 = vmatprep.subr.bf16.mxu1 %v4118_v39  ;;  %v779_v38 = vmax.bf16 %v4500_v0, %v4651_v56  ;;  %v4194_v39 = vld [vmem:[#allocation4 + $0x624] ss:$16 sps:$4 sm:$0xff]   ;;  %v4198_v56 = vld [vmem:[#allocation4 + $0x640] ss:$16 sps:$4 sm:$0xff]  }
 0x19e   :  { %2414 = vmatpush1.bf16.msra.mxu0 %v4113_v40  ;;  %2586 = vmatpush1.bf16.msra.mxu1 %v4116_v41  ;;  %v4197_v40 = vld [vmem:[#allocation4 + $0x62c] ss:$16 sps:$4 sm:$0xff]   ;;  %v782_v41 = vmax.bf16 %v4500_v0, %v774_v35  ;;  %v4273_v35 = vld [vmem:[#allocation4 + $0x7c8] ss:$16 sps:$4 sm:$0xff]  }
 0x19f   :  { %2415 = vmatprep.subr.bf16.mxu0 %v4121_v42  ;;  %2587 = vmatprep.subr.bf16.mxu1 %v4124_v43  ;;  %v4192_v42 = vld [vmem:[#allocation4 + $0x620] ss:$16 sps:$4 sm:$0xff]   ;;  %v4201_v43 = vld [vmem:[#allocation4 + $0x648] ss:$16 sps:$4 sm:$0xff]  }
 0x1a2   :  { %2416 = vmatpush1.bf16.msra.mxu0 %v4119_v44  ;;  %2588 = vmatpush1.bf16.msra.mxu1 %v4122_v45  ;;  %v4206_v44 = vld [vmem:[#allocation4 + $0x664] ss:$16 sps:$4 sm:$0xff]   ;;  %v4209_v45 = vld [vmem:[#allocation4 + $0x66c] ss:$16 sps:$4 sm:$0xff]  }
 0x1a3   :  { %2417 = vmatprep.subr.bf16.mxu0 %v4127_v57  ;;  %2589 = vmatprep.subr.bf16.mxu1 %v4130_v47  ;;  %v4204_v57 = vld [vmem:[#allocation4 + $0x660] ss:$16 sps:$4 sm:$0xff]   ;;  %v4207_v47 = vld [vmem:[#allocation4 + $0x668] ss:$16 sps:$4 sm:$0xff]  }
 0x1a6   :  { %2418 = vmatpush1.bf16.msra.mxu0 %v4125_v48  ;;  %2590 = vmatpush1.bf16.msra.mxu1 %v4128_v49  ;;  %v4212_v48 = vld [vmem:[#allocation4 + $0x684] ss:$16 sps:$4 sm:$0xff]   ;;  %v4215_v49 = vld [vmem:[#allocation4 + $0x68c] ss:$16 sps:$4 sm:$0xff]  }
 0x1a7   :  { %2419 = vmatprep.subr.bf16.mxu0 %v4133_v50  ;;  %2591 = vmatprep.subr.bf16.mxu1 %v4136_v51  ;;  %v4210_v50 = vld [vmem:[#allocation4 + $0x680] ss:$16 sps:$4 sm:$0xff]   ;;  %v4213_v51 = vld [vmem:[#allocation4 + $0x688] ss:$16 sps:$4 sm:$0xff]  }
 0x1aa   :  { %2420 = vmatpush1.bf16.msra.mxu0 %v4131_v53  ;;  %2592 = vmatpush1.bf16.msra.mxu1 %v4134_v58  ;;  %v4218_v53 = vld [vmem:[#allocation4 + $0x6a4] ss:$16 sps:$4 sm:$0xff]   ;;  %v4221_v58 = vld [vmem:[#allocation4 + $0x6ac] ss:$16 sps:$4 sm:$0xff]  }
 0x1ab   :  { %2421 = vmatprep.subr.bf16.mxu0 %v4139_v59  ;;  %2593 = vmatprep.subr.bf16.mxu1 %v4142_v31  ;;  %v4216_v59 = vld [vmem:[#allocation4 + $0x6a0] ss:$16 sps:$4 sm:$0xff]   ;;  %v4219_v31 = vld [vmem:[#allocation4 + $0x6a8] ss:$16 sps:$4 sm:$0xff]  }
 0x1ae   :  { %2422 = vmatpush1.bf16.msra.mxu0 %v4137_v60  ;;  %2594 = vmatpush1.bf16.msra.mxu1 %v4140_v61  ;;  %v4224_v60 = vld [vmem:[#allocation4 + $0x6c4] ss:$16 sps:$4 sm:$0xff]   ;;  %v4227_v61 = vld [vmem:[#allocation4 + $0x6cc] ss:$16 sps:$4 sm:$0xff]  }
 0x1af   :  { %2423 = vmatprep.subr.bf16.mxu0 %v4145_v62  ;;  %2595 = vmatprep.subr.bf16.mxu1 %v4148_v63  ;;  %v4222_v62 = vld [vmem:[#allocation4 + $0x6c0] ss:$16 sps:$4 sm:$0xff]   ;;  %v4225_v63 = vld [vmem:[#allocation4 + $0x6c8] ss:$16 sps:$4 sm:$0xff]  }
 0x1b2   :  { %2424 = vmatpush1.bf16.msra.mxu0 %v4143_v1  ;;  %2596 = vmatpush1.bf16.msra.mxu1 %v4146_v17  ;;  %v4230_v1 = vld [vmem:[#allocation4 + $0x6e4] ss:$16 sps:$4 sm:$0xff]   ;;  %v4233_v17 = vld [vmem:[#allocation4 + $0x6ec] ss:$16 sps:$4 sm:$0xff]  }
 0x1b3   :  { %2425 = vmatprep.subr.bf16.mxu0 %v4151_v2  ;;  %2597 = vmatprep.subr.bf16.mxu1 %v4154_v3  ;;  %v4228_v2 = vld [vmem:[#allocation4 + $0x6e0] ss:$16 sps:$4 sm:$0xff]   ;;  %v4231_v3 = vld [vmem:[#allocation4 + $0x6e8] ss:$16 sps:$4 sm:$0xff]  }
 0x1b6   :  { %2426 = vmatpush1.bf16.msra.mxu0 %v4149_v4  ;;  %2598 = vmatpush1.bf16.msra.mxu1 %v4152_v5  ;;  %v4236_v4 = vld [vmem:[#allocation4 + $0x704] ss:$16 sps:$4 sm:$0xff]   ;;  %v4239_v5 = vld [vmem:[#allocation4 + $0x70c] ss:$16 sps:$4 sm:$0xff]  }
 0x1b7   :  { %2427 = vmatprep.subr.bf16.mxu0 %v4157_v34  ;;  %2599 = vmatprep.subr.bf16.mxu1 %v4160_v7  ;;  %v4234_v34 = vld [vmem:[#allocation4 + $0x700] ss:$16 sps:$4 sm:$0xff]   ;;  %v4237_v7 = vld [vmem:[#allocation4 + $0x708] ss:$16 sps:$4 sm:$0xff]  }
 0x1ba   :  { %2428 = vmatpush1.bf16.msra.mxu0 %v4155_v8  ;;  %2600 = vmatpush1.bf16.msra.mxu1 %v4158_v9  ;;  %v4242_v8 = vld [vmem:[#allocation4 + $0x724] ss:$16 sps:$4 sm:$0xff]   ;;  %v4245_v9 = vld [vmem:[#allocation4 + $0x72c] ss:$16 sps:$4 sm:$0xff]  }
 0x1bb   :  { %2429 = vmatprep.subr.bf16.mxu0 %v4163_v10  ;;  %2601 = vmatprep.subr.bf16.mxu1 %v4166_v14  ;;  %v4240_v10 = vld [vmem:[#allocation4 + $0x720] ss:$16 sps:$4 sm:$0xff]   ;;  %v4243_v14 = vld [vmem:[#allocation4 + $0x728] ss:$16 sps:$4 sm:$0xff]  }
 0x1be   :  { %2430 = vmatpush1.bf16.msra.mxu0 %v4161_v15  ;;  %2602 = vmatpush1.bf16.msra.mxu1 %v4164_v21  ;;  %v4248_v15 = vld [vmem:[#allocation4 + $0x744] ss:$16 sps:$4 sm:$0xff]   ;;  %v4251_v21 = vld [vmem:[#allocation4 + $0x74c] ss:$16 sps:$4 sm:$0xff]  }
 0x1bf   :  { %2431 = vmatprep.subr.bf16.mxu0 %v4169_v22  ;;  %2603 = vmatprep.subr.bf16.mxu1 %v4172_v23  ;;  %v4246_v22 = vld [vmem:[#allocation4 + $0x740] ss:$16 sps:$4 sm:$0xff]   ;;  %v4249_v23 = vld [vmem:[#allocation4 + $0x748] ss:$16 sps:$4 sm:$0xff]  }
 0x1c2   :  { %2432 = vmatpush1.bf16.msra.mxu0 %v4167_v26  ;;  %2604 = vmatpush1.bf16.msra.mxu1 %v4170_v27  ;;  %v4257_v26 = vld [vmem:[#allocation4 + $0x76c] ss:$16 sps:$4 sm:$0xff]   ;;  %v4252_v27 = vld [vmem:[#allocation4 + $0x760] ss:$16 sps:$4 sm:$0xff]  }
 0x1c3   :  { %2433 = vmatprep.subr.bf16.mxu0 %v4176_v28  ;;  %2605 = vmatprep.subr.bf16.mxu1 %v4179_v11  ;;  %v4255_v28 = vld [vmem:[#allocation4 + $0x768] ss:$16 sps:$4 sm:$0xff]   ;;  %v4260_v11 = vld [vmem:[#allocation4 + $0x784] ss:$16 sps:$4 sm:$0xff]  }
 0x1c6   :  { %2434 = vmatpush1.bf16.msra.mxu0 %v4174_v19  ;;  %2606 = vmatpush1.bf16.msra.mxu1 %v4177_v29  ;;  %v4258_v19 = vld [vmem:[#allocation4 + $0x780] ss:$16 sps:$4 sm:$0xff]   ;;  %v4261_v29 = vld [vmem:[#allocation4 + $0x788] ss:$16 sps:$4 sm:$0xff]  }
 0x1c7   :  { %2435 = vmatprep.subr.bf16.mxu0 %v4182_v30  ;;  %2607 = vmatprep.subr.bf16.mxu1 %v4185_v46  ;;  %v4266_v30 = vld [vmem:[#allocation4 + $0x7a4] ss:$16 sps:$4 sm:$0xff]   ;;  %v4269_v46 = vld [vmem:[#allocation4 + $0x7ac] ss:$16 sps:$4 sm:$0xff]  }
 0x1ca   :  { %2436 = vmatpush1.bf16.msra.mxu0 %v4180_v54  ;;  %2608 = vmatpush1.bf16.msra.mxu1 %v4183_v55  ;;  %v4267_v54 = vld [vmem:[#allocation4 + $0x7a8] ss:$16 sps:$4 sm:$0xff]   ;;  %v4272_v55 = vld [vmem:[#allocation4 + $0x7c4] ss:$16 sps:$4 sm:$0xff]  }
 0x1cb   :  { %2448 = vmatprep.subr.bf16.mxu0 %v4188_v32  ;;  %2620 = vmatprep.subr.bf16.mxu1 %v4191_v33  ;;  %v4275_v32 = vld [vmem:[#allocation4 + $0x7cc] ss:$16 sps:$4 sm:$0xff]   ;;  %v4270_v33 = vld [vmem:[#allocation4 + $0x7c0] ss:$16 sps:$4 sm:$0xff]  }
 0x1cd   :  { %2438 = vmatmul.mubr.bf16.vlgmr.msra.gmra.mrb[4].mxu0 %v779_v38  ;;  %2610 = vmatmul.mubr.bf16.vlgmr.msra.gmra.mrb[12].mxu1 %v779_v38  ;;  %v4276_v38 = vld [vmem:[#allocation4 + $0x7e0] ss:$16 sps:$4 sm:$0xff]  }
 0x1ce   :  { %2449 = vmatpush1.bf16.msra.mxu0 %v4186_v36  ;;  %2621 = vmatpush1.bf16.msra.mxu1 %v4189_v37  ;;  %v4278_v36 = vld [vmem:[#allocation4 + $0x7e4] ss:$16 sps:$4 sm:$0xff]   ;;  %v4281_v37 = vld [vmem:[#allocation4 + $0x7ec] ss:$16 sps:$4 sm:$0xff]  }
 0x1cf   :  { %2450 = vmatprep.subr.bf16.mxu0 %v4194_v39  ;;  %2622 = vmatprep.subr.bf16.mxu1 %v4197_v40  ;;  %v4279_v39 = vld [vmem:[#allocation4 + $0x7e8] ss:$16 sps:$4 sm:$0xff]   ;;  %v4284_v40 = vld [vmem:[#allocation6 + $0x4] ss:$8 sps:$4 sm:$0xff]  }
 0x1d0   :  { %2480 = vmatprep.mubr.bf16.mxu0 %v782_v41  ;;  %2652 = vmatprep.mubr.bf16.mxu1 %v782_v41  ;;  %v4282_v41 = vld [vmem:[#allocation6] ss:$8 sps:$4 sm:$0xff]  }
 0x1d2   :  { %2451 = vmatpush1.bf16.msra.mxu0 %v4192_v42  ;;  %2623 = vmatpush1.bf16.msra.mxu1 %v4195_v6  ;;  %v781_v42 = vmax.bf16 %v4500_v0, %v4686_v24  ;;  %v4287_v6 = vld [vmem:[#allocation6 + $0x14] ss:$8 sps:$4 sm:$0xff]  }
 0x1d3   :  { %2452 = vmatprep.subr.bf16.mxu0 %v4200_v12  ;;  %2624 = vmatprep.subr.bf16.mxu1 %v4203_v18  ;;  %v4285_v12 = vld [vmem:[#allocation6 + $0x10] ss:$8 sps:$4 sm:$0xff]   ;;  %v4290_v18 = vld [vmem:[#allocation6 + $0x24] ss:$8 sps:$4 sm:$0xff]   ;;  %v4299_v24 = vld [vmem:[#allocation6 + $0x54] ss:$8 sps:$4 sm:$0xff]  }
 0x1d6   :  { %2453 = vmatpush1.bf16.msra.mxu0 %v4198_v56  ;;  %2625 = vmatpush1.bf16.msra.mxu1 %v4201_v43  ;;  %v4288_v56 = vld [vmem:[#allocation6 + $0x20] ss:$8 sps:$4 sm:$0xff]   ;;  %v4293_v43 = vld [vmem:[#allocation6 + $0x34] ss:$8 sps:$4 sm:$0xff]  }
 0x1d7   :  { %2454 = vmatprep.subr.bf16.mxu0 %v4206_v44  ;;  %2626 = vmatprep.subr.bf16.mxu1 %v4209_v45  ;;  %v4291_v44 = vld [vmem:[#allocation6 + $0x30] ss:$8 sps:$4 sm:$0xff]   ;;  %v4296_v45 = vld [vmem:[#allocation6 + $0x44] ss:$8 sps:$4 sm:$0xff]  }
 0x1da   :  { %2455 = vmatpush1.bf16.msra.mxu0 %v4204_v57  ;;  %2627 = vmatpush1.bf16.msra.mxu1 %v4207_v47  ;;  %v4294_v57 = vld [vmem:[#allocation6 + $0x40] ss:$8 sps:$4 sm:$0xff]   ;;  %v4297_v47 = vld [vmem:[#allocation6 + $0x50] ss:$8 sps:$4 sm:$0xff]  }
 0x1db   :  { %2456 = vmatprep.subr.bf16.mxu0 %v4212_v48  ;;  %2628 = vmatprep.subr.bf16.mxu1 %v4215_v49  ;;  %v4302_v48 = vld [vmem:[#allocation6 + $0x64] ss:$8 sps:$4 sm:$0xff]   ;;  %v4300_v49 = vld [vmem:[#allocation6 + $0x60] ss:$8 sps:$4 sm:$0xff]  }
 0x1de   :  { %2457 = vmatpush1.bf16.msra.mxu0 %v4210_v50  ;;  %2629 = vmatpush1.bf16.msra.mxu1 %v4213_v51  ;;  %v4305_v50 = vld [vmem:[#allocation6 + $0x74] ss:$8 sps:$4 sm:$0xff]   ;;  %v4303_v51 = vld [vmem:[#allocation6 + $0x70] ss:$8 sps:$4 sm:$0xff]  }
 0x1df   :  { %2458 = vmatprep.subr.bf16.mxu0 %v4218_v53  ;;  %2630 = vmatprep.subr.bf16.mxu1 %v4221_v58  ;;  %v4308_v53 = vld [vmem:[#allocation6 + $0x84] ss:$8 sps:$4 sm:$0xff]   ;;  %v4306_v58 = vld [vmem:[#allocation6 + $0x80] ss:$8 sps:$4 sm:$0xff]  }
 0x1e2   :  { %2459 = vmatpush1.bf16.msra.mxu0 %v4216_v59  ;;  %2631 = vmatpush1.bf16.msra.mxu1 %v4219_v31  ;;  %v4311_v59 = vld [vmem:[#allocation6 + $0x94] ss:$8 sps:$4 sm:$0xff]   ;;  %v4309_v31 = vld [vmem:[#allocation6 + $0x90] ss:$8 sps:$4 sm:$0xff]  }
 0x1e3   :  { %2460 = vmatprep.subr.bf16.mxu0 %v4224_v60  ;;  %2632 = vmatprep.subr.bf16.mxu1 %v4227_v61  ;;  %v4314_v60 = vld [vmem:[#allocation6 + $0xa4] ss:$8 sps:$4 sm:$0xff]   ;;  %v4312_v61 = vld [vmem:[#allocation6 + $0xa0] ss:$8 sps:$4 sm:$0xff]  }
 0x1e6   :  { %2461 = vmatpush1.bf16.msra.mxu0 %v4222_v62  ;;  %2633 = vmatpush1.bf16.msra.mxu1 %v4225_v63  ;;  %v4317_v62 = vld [vmem:[#allocation6 + $0xb4] ss:$8 sps:$4 sm:$0xff]   ;;  %v4315_v63 = vld [vmem:[#allocation6 + $0xb0] ss:$8 sps:$4 sm:$0xff]  }
 0x1e7   :  { %2462 = vmatprep.subr.bf16.mxu0 %v4230_v1  ;;  %2634 = vmatprep.subr.bf16.mxu1 %v4233_v17  ;;  %v4320_v1 = vld [vmem:[#allocation6 + $0xc4] ss:$8 sps:$4 sm:$0xff]   ;;  %v4318_v17 = vld [vmem:[#allocation6 + $0xc0] ss:$8 sps:$4 sm:$0xff]  }
 0x1ea   :  { %2463 = vmatpush1.bf16.msra.mxu0 %v4228_v2  ;;  %2635 = vmatpush1.bf16.msra.mxu1 %v4231_v3  ;;  %v4323_v2 = vld [vmem:[#allocation6 + $0xd4] ss:$8 sps:$4 sm:$0xff]   ;;  %v4321_v3 = vld [vmem:[#allocation6 + $0xd0] ss:$8 sps:$4 sm:$0xff]  }
 0x1eb   :  { %2464 = vmatprep.subr.bf16.mxu0 %v4236_v4  ;;  %2636 = vmatprep.subr.bf16.mxu1 %v4239_v5  ;;  %v4326_v4 = vld [vmem:[#allocation6 + $0xe4] ss:$8 sps:$4 sm:$0xff]   ;;  %v4324_v5 = vld [vmem:[#allocation6 + $0xe0] ss:$8 sps:$4 sm:$0xff]  }
 0x1ee   :  { %2465 = vmatpush1.bf16.msra.mxu0 %v4234_v34  ;;  %2637 = vmatpush1.bf16.msra.mxu1 %v4237_v7  ;;  %v4329_v34 = vld [vmem:[#allocation6 + $0xf4] ss:$8 sps:$4 sm:$0xff]   ;;  %v4327_v7 = vld [vmem:[#allocation6 + $0xf0] ss:$8 sps:$4 sm:$0xff]  }
 0x1ef   :  { %2466 = vmatprep.subr.bf16.mxu0 %v4242_v8  ;;  %2638 = vmatprep.subr.bf16.mxu1 %v4245_v9  ;;  %v4332_v8 = vld [vmem:[#allocation6 + $0x104] ss:$8 sps:$4 sm:$0xff]  }
 0x1f0   :  { %v4378_v9 = vld [vmem:[#allocation7 + $0x40] sm:$0xff]  }
 0x1f2   :  { %2467 = vmatpush1.bf16.msra.mxu0 %v4240_v10  ;;  %2639 = vmatpush1.bf16.msra.mxu1 %v4243_v14  ;;  %v4379_v10 = vld [vmem:[#allocation7] sm:$0xff]   ;;  %v4380_v14 = vld [vmem:[#allocation7 + $0x48] sm:$0xff]  }
 0x1f3   :  { %2468 = vmatprep.subr.bf16.mxu0 %v4248_v15  ;;  %2640 = vmatprep.subr.bf16.mxu1 %v4251_v21  ;;  %v4381_v15 = vld [vmem:[#allocation7 + $0x8] sm:$0xff]   ;;  %v4382_v21 = vld [vmem:[#allocation7 + $0x50] sm:$0xff]  }
 0x1f6   :  { %2469 = vmatpush1.bf16.msra.mxu0 %v4246_v22  ;;  %2641 = vmatpush1.bf16.msra.mxu1 %v4249_v23  ;;  %v4383_v22 = vld [vmem:[#allocation7 + $0x10] sm:$0xff]   ;;  %v4384_v23 = vld [vmem:[#allocation7 + $0x58] sm:$0xff]  }
 0x1f7   :  { %2470 = vmatprep.subr.bf16.mxu0 %v4254_v25  ;;  %2642 = vmatprep.subr.bf16.mxu1 %v4257_v26  ;;  %v4385_v25 = vld [vmem:[#allocation7 + $0x18] sm:$0xff]   ;;  %v4386_v26 = vld [vmem:[#allocation7 + $0x60] sm:$0xff]  }
 0x1fa   :  { %2471 = vmatpush1.bf16.msra.mxu0 %v4252_v27  ;;  %2643 = vmatpush1.bf16.msra.mxu1 %v4255_v28  ;;  %v4387_v27 = vld [vmem:[#allocation7 + $0x20] sm:$0xff]   ;;  %v4388_v28 = vld [vmem:[#allocation7 + $0x68] sm:$0xff]  }
 0x1fb   :  { %2472 = vmatprep.subr.bf16.mxu0 %v4260_v11  ;;  %2644 = vmatprep.subr.bf16.mxu1 %v4263_v16  ;;  %v3749_v11 = vld.sshfl [vmem:[%s4754_s4] sm:$0x33 pattern:$0x75316420] }
 0x1fc   :  { %v2676_v16 = vcombine.high %v3749_v11, %v3749_v11 }
 0x1fe   :  { %2473 = vmatpush1.bf16.msra.mxu0 %v4258_v19  ;;  %2645 = vmatpush1.bf16.msra.mxu1 %v4261_v29  ;;  %v2690_v19 = vrot.slane %v2676_v16, %v4613_v13  ;;  %v4375_v16 = vld [vmem:[#allocation6 + $0x1f0] ss:$8 sps:$4 sm:$0xff]  }
 0x1ff   :  { %2474 = vmatprep.subr.bf16.mxu0 %v4266_v30  ;;  %2646 = vmatprep.subr.bf16.mxu1 %v4269_v46  ;;  %v4709_v30 = vrot.slane %v3749_v11, %v4613_v13  ;;  %v4377_v11 = vld [vmem:[#allocation6 + $0x1f4] ss:$8 sps:$4 sm:$0xff]  }
 0x200   :  { %v2692_v29 = vcombine.high %v2690_v19, %v2690_v19 }
 0x201   :  { %v2694_v46 = vpack.i.b16 %v4709_v30, %v4709_v30 }
 0x202   :  { %2475 = vmatpush1.bf16.msra.mxu0 %v4264_v52  ;;  %2647 = vmatpush1.bf16.msra.mxu1 %v4267_v54  ;;  %v2701_v52 = vpack.i.b16 %v2690_v19, %v2690_v19  ;;  %v2715_v54 = vpack.i.b16 %v2692_v29, %v2692_v29 }
 0x203   :  { %2476 = vmatprep.subr.bf16.mxu0 %v4272_v55  ;;  %2648 = vmatprep.subr.bf16.mxu1 %v4275_v32 }
 0x206   :  { %2477 = vmatpush1.bf16.msra.mxu0 %v4270_v33  ;;  %2649 = vmatpush1.bf16.msra.mxu1 %v4273_v35 }
 0x207   :  { %2478 = vmatprep.subr.bf16.mxu0 %v4278_v36  ;;  %2650 = vmatprep.subr.bf16.mxu1 %v4281_v37  ;;  %v2699_v36 = vrot.slane %v2694_v46, %v4627_v20  ;;  %v4390_v46 = vld [vmem:[#allocation7 + $0x70] sm:$0xff]  }
 0x20a   :  { %2479 = vmatpush1.bf16.msra.mxu0 %v4276_v38  ;;  %2651 = vmatpush1.bf16.msra.mxu1 %v4279_v39  ;;  %v2706_v39 = vrot.slane %v2701_v52, %v4627_v20  ;;  %v4391_v52 = vld [vmem:[#allocation7 + $0x30] sm:$0xff]  }
 0x20b   :  { %3113 = vmatprep.subr.bf16.mxu0 %v4284_v40  ;;  %3832 = vmatprep.subr.bf16.mxu1 %v4378_v9  ;;  %v2720_v40 = vrot.slane %v2715_v54, %v4627_v20  ;;  %v4365_v9 = vld [vmem:[#allocation6 + $0x1b4] ss:$8 sps:$4 sm:$0xff]  }
 0x20c   :  { %v4392_v54 = vld [vmem:[#allocation7 + $0x78] sm:$0xff]  }
 0x20d   :  { %2481 = vmatmul.mubr.bf16.vlgmr.msra.gmra.mrb[4].mxu0 %v781_v42  ;;  %2653 = vmatmul.mubr.bf16.vlgmr.msra.gmra.mrb[12].mxu1 %v781_v42 }
 0x20e   :  { %3114 = vmatpush1.bf16.msra.mxu0 %v4282_v41  ;;  %3833 = vmatpush3.bf16.msra.mxu1 %v4379_v10  ;;  %v4363_v10 = vld [vmem:[#allocation6 + $0x1b0] ss:$8 sps:$4 sm:$0xff]  }
 0x20f   :  { %3115 = vmatprep.subr.bf16.mxu0 %v4287_v6  ;;  %3834 = vmatprep.subr.bf16.mxu1 %v4380_v14  ;;  %v4368_v14 = vld [vmem:[#allocation6 + $0x1c4] ss:$8 sps:$4 sm:$0xff]  }
 0x212   :  { %3116 = vmatpush1.bf16.msra.mxu0 %v4285_v12  ;;  %3835 = vmatpush3.bf16.msra.mxu1 %v4381_v15  ;;  %v4366_v15 = vld [vmem:[#allocation6 + $0x1c0] ss:$8 sps:$4 sm:$0xff]  }
 0x213   :  { %3117 = vmatprep.subr.bf16.mxu0 %v4290_v18  ;;  %3836 = vmatprep.subr.bf16.mxu1 %v4382_v21  ;;  %v2691_v21 = vcombine.high %v4709_v30, %v4709_v30  ;;  %v4389_v30 = vld [vmem:[#allocation7 + $0x28] sm:$0xff]  }
 0x216   :  { %3118 = vmatpush1.bf16.msra.mxu0 %v4288_v56  ;;  %3837 = vmatpush3.bf16.msra.mxu1 %v4383_v22  ;;  %v4371_v22 = vld [vmem:[#allocation6 + $0x1d4] ss:$8 sps:$4 sm:$0xff]  }
 0x217   :  { %3119 = vmatprep.subr.bf16.mxu0 %v4293_v43  ;;  %3838 = vmatprep.subr.bf16.mxu1 %v4384_v23  ;;  %v4369_v23 = vld [vmem:[#allocation6 + $0x1d0] ss:$8 sps:$4 sm:$0xff]  }
 0x21a   :  { %3120 = vmatpush1.bf16.msra.mxu0 %v4291_v44  ;;  %3839 = vmatpush3.bf16.msra.mxu1 %v4385_v25  ;;  %v2708_v25 = vpack.i.b16 %v2691_v21, %v2691_v21 }
 0x21b   :  { %3121 = vmatprep.subr.bf16.mxu0 %v4296_v45  ;;  %3840 = vmatprep.subr.bf16.mxu1 %v4386_v26  ;;  %v4374_v26 = vld [vmem:[#allocation6 + $0x1e4] ss:$8 sps:$4 sm:$0xff]  }
 0x21e   :  { %3122 = vmatpush1.bf16.msra.mxu0 %v4294_v57  ;;  %3841 = vmatpush3.bf16.msra.mxu1 %v4387_v27  ;;  %v4372_v27 = vld [vmem:[#allocation6 + $0x1e0] ss:$8 sps:$4 sm:$0xff]  }
 0x21f   :  { %3123 = vmatprep.subr.bf16.mxu0 %v4299_v24  ;;  %3842 = vmatprep.subr.bf16.mxu1 %v4388_v28  ;;  %v4330_v24 = vld [vmem:[#allocation6 + $0x100] ss:$8 sps:$4 sm:$0xff]   ;;  %v2713_v28 = vrot.slane %v2708_v25, %v4627_v20 }
 0x222   :  { %3124 = vmatpush1.bf16.msra.mxu0 %v4297_v47  ;;  %3843 = vmatpush3.bf16.msra.mxu1 %v4389_v30 }
 0x223   :  { %3125 = vmatprep.subr.bf16.mxu0 %v4302_v48  ;;  %v4335_v48 = vld [vmem:[#allocation6 + $0x114] ss:$8 sps:$4 sm:$0xff]   ;;  %3844 = vmatprep.subr.bf16.mxu1 %v4390_v46 }
 0x226   :  { %3126 = vmatpush1.bf16.msra.mxu0 %v4300_v49  ;;  %3845 = vmatpush3.bf16.msra.mxu1 %v4391_v52 }
 0x227   :  { %3127 = vmatprep.subr.bf16.mxu0 %v4305_v50  ;;  %v4333_v50 = vld [vmem:[#allocation6 + $0x110] ss:$8 sps:$4 sm:$0xff]   ;;  %3846 = vmatprep.subr.bf16.mxu1 %v4392_v54 }
 0x22a   :  { %3128 = vmatpush1.bf16.msra.mxu0 %v4303_v51  ;;  %v4338_v51 = vld [vmem:[#allocation6 + $0x124] ss:$8 sps:$4 sm:$0xff]  }
 0x22b   :  { %3129 = vmatprep.subr.bf16.mxu0 %v4308_v53  ;;  %v4336_v53 = vld [vmem:[#allocation6 + $0x120] ss:$8 sps:$4 sm:$0xff]  }
 0x22e   :  { %3130 = vmatpush1.bf16.msra.mxu0 %v4306_v58  ;;  %v4341_v58 = vld [vmem:[#allocation6 + $0x134] ss:$8 sps:$4 sm:$0xff]  }
 0x22f   :  { %3131 = vmatprep.subr.bf16.mxu0 %v4311_v59  ;;  %v4339_v59 = vld [vmem:[#allocation6 + $0x130] ss:$8 sps:$4 sm:$0xff]  }
 0x232   :  { %3132 = vmatpush1.bf16.msra.mxu0 %v4309_v31  ;;  %v4344_v31 = vld [vmem:[#allocation6 + $0x144] ss:$8 sps:$4 sm:$0xff]  }
 0x233   :  { %3133 = vmatprep.subr.bf16.mxu0 %v4314_v60  ;;  %v4342_v60 = vld [vmem:[#allocation6 + $0x140] ss:$8 sps:$4 sm:$0xff]  }
 0x236   :  { %3134 = vmatpush1.bf16.msra.mxu0 %v4312_v61  ;;  %v4347_v61 = vld [vmem:[#allocation6 + $0x154] ss:$8 sps:$4 sm:$0xff]  }
 0x237   :  { %3135 = vmatprep.subr.bf16.mxu0 %v4317_v62  ;;  %v4345_v62 = vld [vmem:[#allocation6 + $0x150] ss:$8 sps:$4 sm:$0xff]  }
 0x23a   :  { %3136 = vmatpush1.bf16.msra.mxu0 %v4315_v63  ;;  %v4350_v63 = vld [vmem:[#allocation6 + $0x164] ss:$8 sps:$4 sm:$0xff]  }
 0x23b   :  { %3137 = vmatprep.subr.bf16.mxu0 %v4320_v1  ;;  %v4348_v1 = vld [vmem:[#allocation6 + $0x160] ss:$8 sps:$4 sm:$0xff]  }
 0x23e   :  { %3138 = vmatpush1.bf16.msra.mxu0 %v4318_v17  ;;  %v4353_v17 = vld [vmem:[#allocation6 + $0x174] ss:$8 sps:$4 sm:$0xff]  }
 0x23f   :  { %3139 = vmatprep.subr.bf16.mxu0 %v4323_v2  ;;  %v4351_v2 = vld [vmem:[#allocation6 + $0x170] ss:$8 sps:$4 sm:$0xff]  }
 0x242   :  { %3140 = vmatpush1.bf16.msra.mxu0 %v4321_v3  ;;  %v4356_v3 = vld [vmem:[#allocation6 + $0x184] ss:$8 sps:$4 sm:$0xff]  }
 0x243   :  { %3141 = vmatprep.subr.bf16.mxu0 %v4326_v4  ;;  %v4354_v4 = vld [vmem:[#allocation6 + $0x180] ss:$8 sps:$4 sm:$0xff]  }
 0x246   :  { %3142 = vmatpush1.bf16.msra.mxu0 %v4324_v5  ;;  %v4359_v5 = vld [vmem:[#allocation6 + $0x194] ss:$8 sps:$4 sm:$0xff]  }
 0x247   :  { %3143 = vmatprep.subr.bf16.mxu0 %v4329_v34  ;;  %v4357_v34 = vld [vmem:[#allocation6 + $0x190] ss:$8 sps:$4 sm:$0xff]  }
 0x24a   :  { %3144 = vmatpush1.bf16.msra.mxu0 %v4327_v7  ;;  %v4362_v7 = vld [vmem:[#allocation6 + $0x1a4] ss:$8 sps:$4 sm:$0xff]  }
 0x24b   :  { %3156 = vmatprep.subr.bf16.mxu0 %v4332_v8  ;;  %v4360_v8 = vld [vmem:[#allocation6 + $0x1a0] ss:$8 sps:$4 sm:$0xff]  }
 0x2e0   :  { %v2482_v55 = vpop.f32.mrb[4].mxu0  ;;  %v4713_v32 = vpop.f32.mrb[12].mxu1 }
 0x2e1   :  { %v2484_v33 = vpop.f32.mrb[5].mxu0  ;;  %v2656_v35 = vpop.f32.mrb[13].mxu1 }
 0x2e2   :  { %v2486_v37 = vpop.f32.mrb[6].mxu0  ;;  %v4716_v38 = vpop.f32.mrb[14].mxu1 }
 0x2e3   :  { %v2663_v41 = vpack.c.bf16 %v2486_v37, %v2482_v55  ;;  %v2665_v42 = vpack.c.bf16 %v4716_v38, %v4713_v32  ;;  %v2488_v6 = vpop.f32.mrb[7].mxu0  ;;  %v2660_v12 = vpop.f32.mrb[15].mxu1  ;;  %v4393_v55 = vld [vmem:[#allocation7 + $0x38] sm:$0xff]  }
 0x2e4   :  { %v2664_v18 = vpack.c.bf16 %v2488_v6, %v2484_v33  ;;  %v2666_v56 = vpack.c.bf16 %v2660_v12, %v2656_v35  ;;  %3847 = vmatpush3.bf16.msra.mxu1 %v4393_v55  ;;  %v3814_v32 = vld.sshfl [vmem:[%s4756_s6] sm:$0x11 pattern:$0x75316420] }
 0x2e5   :  { %v2721_v43 = vadd.bf16 %v2699_v36, %v2663_v41  ;;  %v2723_v19 = vadd.bf16 %v2713_v28, %v2665_v42  ;;  %v3210_v33 = vcombine.high %v3814_v32, %v3814_v32  ;;  %v3217_v35 = vrot.slane %v3814_v32, %v4613_v13 }
 0x2e6   :  { %v2722_v44 = vadd.bf16 %v2706_v39, %v2664_v18  ;;  %v2724_v45 = vadd.bf16 %v2720_v40, %v2666_v56 }
 0x2e7   :  { %v2725_v47 = vmax.bf16 %v4500_v0, %v2721_v43  ;;  %v2727_v29 = vmax.bf16 %v4500_v0, %v2723_v19  ;;  %v3224_v36 = vrot.slane %v3210_v33, %v4613_v13  ;;  %v3226_v37 = vpack.i.b16 %v3217_v35, %v3217_v35 }
 0x2e8   :  { %v2726_v57 = vmax.bf16 %v4500_v0, %v2722_v44  ;;  %v2728_v49 = vmax.bf16 %v4500_v0, %v2724_v45 }
 0x2e9   :  { %v3233_v38 = vpack.i.b16 %v3224_v36, %v3224_v36  ;;  %v3231_v41 = vrot.slane %v3226_v37, %v4627_v20 }
 0x2ea   :  { %3145 = vmatprep.mubr.bf16.mxu0 %v2726_v57 }
 0x2eb   :  { %3146 = vmatmul.mubr.bf16.vlgmr.msra.gmra.mrb[8].mxu0 %v2725_v47  ;;  %v3238_v6 = vrot.slane %v3233_v38, %v4627_v20 }
 0x2ec   :  { %3157 = vmatpush1.bf16.msra.mxu0 %v4330_v24  ;;  %3188 = vmatprep.mubr.bf16.mxu0 %v2728_v49  ;;  %v3815_v24 = vld [vmem:[%s4758_s8] ss:$0 sm:$0xff] }
 0x2ed   :  { %3158 = vmatprep.subr.bf16.mxu0 %v4335_v48 }
 0x2f0   :  { %3159 = vmatpush1.bf16.msra.mxu0 %v4333_v50 }
 0x2f1   :  { %3160 = vmatprep.subr.bf16.mxu0 %v4338_v51 }
 0x2f4   :  { %3161 = vmatpush1.bf16.msra.mxu0 %v4336_v53 }
 0x2f5   :  { %3162 = vmatprep.subr.bf16.mxu0 %v4341_v58 }
 0x2f8   :  { %3163 = vmatpush1.bf16.msra.mxu0 %v4339_v59 }
 0x2f9   :  { %3164 = vmatprep.subr.bf16.mxu0 %v4344_v31 }
 0x2fc   :  { %3165 = vmatpush1.bf16.msra.mxu0 %v4342_v60 }
 0x2fd   :  { %3166 = vmatprep.subr.bf16.mxu0 %v4347_v61 }
 0x300   :  { %3167 = vmatpush1.bf16.msra.mxu0 %v4345_v62 }
 0x301   :  { %3168 = vmatprep.subr.bf16.mxu0 %v4350_v63 }
 0x304   :  { %3169 = vmatpush1.bf16.msra.mxu0 %v4348_v1 }
 0x305   :  { %3170 = vmatprep.subr.bf16.mxu0 %v4353_v17 }
 0x308   :  { %3171 = vmatpush1.bf16.msra.mxu0 %v4351_v2 }
 0x309   :  { %3172 = vmatprep.subr.bf16.mxu0 %v4356_v3 }
 0x30c   :  { %3173 = vmatpush1.bf16.msra.mxu0 %v4354_v4 }
 0x30d   :  { %3174 = vmatprep.subr.bf16.mxu0 %v4359_v5 }
 0x310   :  { %3175 = vmatpush1.bf16.msra.mxu0 %v4357_v34 }
 0x311   :  { %3176 = vmatprep.subr.bf16.mxu0 %v4362_v7 }
 0x314   :  { %3177 = vmatpush1.bf16.msra.mxu0 %v4360_v8 }
 0x315   :  { %3178 = vmatprep.subr.bf16.mxu0 %v4365_v9 }
 0x318   :  { %3179 = vmatpush1.bf16.msra.mxu0 %v4363_v10 }
 0x319   :  { %3180 = vmatprep.subr.bf16.mxu0 %v4368_v14 }
 0x31c   :  { %3181 = vmatpush1.bf16.msra.mxu0 %v4366_v15 }
 0x31d   :  { %3182 = vmatprep.subr.bf16.mxu0 %v4371_v22 }
 0x320   :  { %3183 = vmatpush1.bf16.msra.mxu0 %v4369_v23 }
 0x321   :  { %3184 = vmatprep.subr.bf16.mxu0 %v4374_v26 }
 0x324   :  { %3185 = vmatpush1.bf16.msra.mxu0 %v4372_v27 }
 0x325   :  { %3186 = vmatprep.subr.bf16.mxu0 %v4377_v11 }
 0x328   :  { %3187 = vmatpush1.bf16.msra.mxu0 %v4375_v16 }
 0x32b   :  { %3189 = vmatmul.mubr.bf16.vlgmr.msra.gmra.mrb[8].mxu0 %v2727_v29 }
 0x3fe   :  { %v3190_v39 = vpop.f32.mrb[8].mxu0 }
 0x3ff   :  { %v3192_v40 = vpop.f32.mrb[9].mxu0 }
 0x400   :  { %v3194_v42 = vpop.f32.mrb[10].mxu0 }
 0x401   :  { %v3199_v12 = vpack.c.bf16 %v3194_v42, %v3190_v39  ;;  %v3196_v18 = vpop.f32.mrb[11].mxu0 }
 0x402   :  { %v3200_v56 = vpack.c.bf16 %v3196_v18, %v3192_v40 }
 0x403   :  { %v3239_v43 = vadd.bf16 %v3231_v41, %v3199_v12 }
 0x404   :  { %v3240_v44 = vadd.bf16 %v3238_v6, %v3200_v56 }
 0x405   :  { %v3241_v57 = vmax.bf16 %v4500_v0, %v3239_v43 }
 0x406   :  { %v3242_v45 = vmax.bf16 %v4500_v0, %v3240_v44 }
 0x408   :  { %3410 = vmatprep.mubr.bf16.mxu1 %v3242_v45 }
 0x409   :  { %3411 = vmatmul.mubr.bf16.vlgmr.msra.gmra.mrb[16].mxu1 %v3241_v57 }
 0x4dc   :  { %v3848_v13 = vpop.f32.mrb[16].mxu1 }
 0x4dd   :  { %v3849_v47 = vpop.f32.mrb[17].mxu1 }
 0x4de   :  { %v3850_v48 = vadd.f32 %v3849_v47, %v3848_v13  ;;  %v3851_v49 = vpop.f32.mrb[18].mxu1 }
 0x4df   :  { %v3852_v20 = vpop.f32.mrb[19].mxu1 }
 0x4e0   :  { %v3413_v50 = vadd.f32 %v3850_v48, %v3815_v24  ;;  %v3853_v51 = vadd.f32 %v3852_v20, %v3851_v49 }
 0x4e2   :  { %3419 = vst [vmem:[%s4759_s9] sm:$0xff] %v3413_v50  ;;  %v3416_v53 = vadd.f32 %v3853_v51, %v3815_v24 }
 0x4e4   :  { %3420 = vst [vmem:[%s4759_s9 + $0x8] sm:$0xff] %v3416_v53 }
 0x4e5   :  { %3425 = vsyncpa [#allocation3], 1 }
 0x4e6   :  { %3426 = vsyncpa [#allocation5], 1 }
 0x4e7   :  { %3427 = vsyncpa [#allocation8], 1 }

</bundles_post_ra>
